<compile_context>
chip_gen: v6e
topology: v6e:2x2x1
jax: 0.10.0
libtpu: 0.0.40
codegen_flags: <defaults>
</compile_context>

<pallas_src>
import numpy as np
import jax
import jax.numpy as jnp
from jax.experimental import pallas as pl
from jax.experimental.pallas import tpu as pltpu

N_WIRES = 4
N_STATES = 16


# ----------------------------------------------------------------------------
# constant tables
# ----------------------------------------------------------------------------
def _embedding_tables():
    """z / ring-zz parity tables and the 4-qubit Hadamard transform (numpy f32)."""
    s = np.arange(N_STATES)
    popc = np.array([bin(v).count("1") for v in range(N_STATES)], dtype=np.int64)
    h16 = (0.25 * ((-1.0) ** popc[(s[:, None] & s[None, :])])).astype(np.float32)
    bits = (s[None, :] >> (N_WIRES - 1 - np.arange(N_WIRES))[:, None]) & 1
    zmat = (1.0 - 2.0 * bits).astype(np.float32)                       # (4, 16)
    pairs = [(0, 1), (1, 2), (2, 3), (3, 0)]
    zzmat = np.stack([zmat[a] * zmat[b] for a, b in pairs], 0)          # (4, 16)
    return h16, zmat, zzmat


def _kernel_constants():
    h16, zmat, zzmat = _embedding_tables()
    # within-group ring shift on the (f1; f2) sublane stack: row i <- f[perm[i]]
    perm = [1, 2, 3, 0, 5, 6, 7, 4]
    pring = np.zeros((8, 8), np.float32)
    pring[np.arange(8), perm] = 1.0

    def stack3(m16x4):
        z = np.zeros_like(m16x4)
        return np.concatenate([
            np.concatenate([m16x4, z], 1),        # rows  0..15: phi1
            np.concatenate([z, m16x4], 1),        # rows 16..31: phi2
            np.concatenate([m16x4, -m16x4], 1),   # rows 32..47: dphi = phi1-phi2
        ], 0).astype(np.float32)

    zl = stack3(zmat.T)     # (48, 8) linear (RZ) coefficients
    zq = stack3(zzmat.T)    # (48, 8) ring-ZZ coefficients
    return (jnp.asarray(h16), jnp.asarray(pring), jnp.asarray(zl), jnp.asarray(zq))


def _block_diag_params(params):
    """Feature-major, zero-padded block-diagonal MLP weights for the [x1; x2] stack."""
    w1, b1, w2, b2, w3, b3 = params

    def bd(wt, rows, cols):
        r, c = wt.shape
        big = jnp.zeros((rows, cols), jnp.float32)
        big = big.at[0:r, 0:c].set(wt)
        big = big.at[rows // 2:rows // 2 + r, cols // 2:cols // 2 + c].set(wt)
        return big

    def bb(b, rows):
        n = b.shape[0]
        big = jnp.zeros((rows, 1), jnp.float32)
        big = big.at[0:n, 0].set(b)
        big = big.at[rows // 2:rows // 2 + n, 0].set(b)
        return big

    return (bd(w1.T, 16, 8), bb(b1, 16),
            bd(w2.T, 16, 16), bb(b2, 16),
            bd(w3.T, 8, 16), bb(b3, 8))


# ----------------------------------------------------------------------------
# kernel
# ----------------------------------------------------------------------------
def fidelity_kernel(x_ref, w1_ref, b1_ref, w2_ref, b2_ref, w3_ref, b3_ref,
                    pr_ref, zl_ref, zq_ref, h16_ref, fid_ref):
    f32 = jnp.float32
    dot = lambda a, b: jnp.dot(a, b, preferred_element_type=f32)

    # --- shared MLP on the sublane-stacked [x1; x2] block (block-diag weights) ---
    x = x_ref[...]                                                   # (8, T)
    h = jnp.maximum(dot(w1_ref[...], x) + b1_ref[...], 0.0)          # (16, T)
    h = jnp.maximum(dot(w2_ref[...], h) + b2_ref[...], 0.0)          # (16, T)
    f = dot(w3_ref[...], h) + b3_ref[...]                            # (8, T): [f1; f2]

    # --- per-basis-state phases: rows 0-15 phi1, 16-31 phi2, 32-47 dphi ----------
    fprod = f * dot(pr_ref[...], f)                                  # ring products
    phi = dot(zl_ref[...], f) + dot(zq_ref[...], fprod)              # (48, T)
    c = jnp.cos(phi)
    s = jnp.sin(phi)
    c1, c2, cd = c[0:16], c[16:32], c[32:48]
    s1, s2, sd = s[0:16], s[16:32], s[32:48]

    h16 = h16_ref[...]

    # --- |<0000| U(f2)^dag U(f1) |0000>|^2 ---------------------------------------
    # H|0000> is uniform -> first phase layer in closed form.
    re = 0.25 * c1
    im = 0.25 * s1
    # interior Hadamard, then the MERGED rotation e^{i phi1} e^{-i phi2} = e^{i dphi}
    hr = dot(h16, re)
    hi = dot(h16, im)
    re = hr * cd - hi * sd
    im = hr * sd + hi * cd
    # interior Hadamard, rotation e^{-i phi2}; last Hadamard realized as row-0 sum
    hr = dot(h16, re)
    hi = dot(h16, im)
    tr = hr * c2 + hi * s2
    ti = hi * c2 - hr * s2
    re0 = 0.25 * jnp.sum(tr, axis=0, keepdims=True)                  # (1, T)
    im0 = 0.25 * jnp.sum(ti, axis=0, keepdims=True)
    fid_ref[...] = re0 * re0 + im0 * im0                             # |<0000|.>|^2


# ----------------------------------------------------------------------------
# wrapper
# ----------------------------------------------------------------------------
def _round_up(x, m):
    return (x + m - 1) // m * m


def four_model1_fidelity(x1, x2, params, *, b_tile=8192):
    B = x1.shape[0]
    # lane-aligned batch tile (multiple of 128); capped at ceil(B/2) so the grid
    # has >=2 "parallel" steps whenever possible (keeps both v7x TCs busy).
    bt = max(128, _round_up(min(b_tile, _round_up((B + 1) // 2, 128)), 128))
    B_pad = _round_up(B, bt)

    # x1/x2 stacked on the sublane axis -> one lane-dense (8, B_pad) input
    xin = jnp.concatenate([x1.T, x2.T], axis=0).astype(jnp.float32)
    xin = jnp.pad(xin, ((0, 0), (0, B_pad - B)))

    w1b, b1b, w2b, b2b, w3b, b3b = _block_diag_params(params)
    h16, pring, zl, zq = _kernel_constants()

    def const(a):
        return pl.BlockSpec(a.shape, lambda i: (0, 0))   # resident across grid

    fid = pl.pallas_call(
        fidelity_kernel,
        out_shape=jax.ShapeDtypeStruct((1, B_pad), jnp.float32),
        grid=(B_pad // bt,),
        in_specs=[
            pl.BlockSpec((8, bt), lambda i: (0, i)),      # [x1; x2] tile
            const(w1b), const(b1b), const(w2b), const(b2b),
            const(w3b), const(b3b),
            const(pring), const(zl), const(zq), const(h16),
        ],
        out_specs=pl.BlockSpec((1, bt), lambda i: (0, i)),
        compiler_params=pltpu.CompilerParams(
            dimension_semantics=("parallel",),            # pipelining + megacore
            vmem_limit_bytes=48 * 1024 * 1024,            # > v5e 16MiB default, < v7x 64MiB
        ),
    )(xin, w1b, b1b, w2b, b2b, w3b, b3b, pring, zl, zq, h16)
    return fid[0, :B]                                     # == x[:, 0] in the torch module


# ----------------------------------------------------------------------------
# pure-JAX reference (batch-major, unmerged rotations) for validation
# ----------------------------------------------------------------------------
def reference_fidelity(x1, x2, params):
    w1, b1, w2, b2, w3, b3 = params

    def mlp(x):
        h = jax.nn.relu(x @ w1 + b1)
        h = jax.nn.relu(h @ w2 + b2)
        return h @ w3 + b3

    f1, f2 = mlp(x1), mlp(x2)
    h16, zmat, zzmat = _embedding_tables()
    h16, zmat, zzmat = jnp.asarray(h16), jnp.asarray(zmat), jnp.asarray(zzmat)

    def phi(f):
        fr = jnp.roll(f, -1, axis=1)
        return f @ zmat + (f * fr) @ zzmat                # (B, 16)

    p1, p2 = phi(f1), phi(f2)
    c1, s1 = jnp.cos(p1), jnp.sin(p1)
    c2, s2 = jnp.cos(p2), jnp.sin(p2)
    re, im = 0.25 * c1, 0.25 * s1
    hr, hi = re @ h16, im @ h16
    re, im = hr * c1 - hi * s1, hr * s1 + hi * c1
    tr, ti = re * c2 + im * s2, im * c2 - re * s2
    re, im = tr @ h16, ti @ h16
    tr, ti = re * c2 + im * s2, im * c2 - re * s2
    re0, im0 = 0.25 * jnp.sum(tr, 1), 0.25 * jnp.sum(ti, 1)
    return re0 * re0 + im0 * im0


def init_params(key):
    """PyTorch-Linear-style init U(-1/sqrt(fan_in), +1/sqrt(fan_in)); w stored (fan_in, fan_out)."""
    dims = [(4, 6), (6, 6), (6, 4)]
    params = []
    for fi, fo in dims:
        key, kw, kb = jax.random.split(key, 3)
        bound = 1.0 / np.sqrt(fi)
        params.append(jax.random.uniform(kw, (fi, fo), jnp.float32, -bound, bound))
        params.append(jax.random.uniform(kb, (fo,), jnp.float32, -bound, bound))
    return tuple(params)


if __name__ == "__main__":
    key = jax.random.PRNGKey(0)
    kx1, kx2, kp = jax.random.split(key, 3)
    B = 8
    x1 = jax.random.normal(kx1, (B, 4), jnp.float32)
    x2 = jax.random.normal(kx2, (B, 4), jnp.float32)
    params = init_params(kp)

    out = jax.block_until_ready(four_model1_fidelity(x1, x2, params))
    ref = jax.block_until_ready(reference_fidelity(x1, x2, params))

    assert out.shape == (B,)
    assert bool(jnp.all(jnp.isfinite(out)))
    assert bool(jnp.all((out >= -1e-5) & (out <= 1.0 + 1e-5)))   # fidelities in [0, 1]
    assert bool(jnp.max(jnp.abs(out - ref)) < 1e-4)
    print("KERNEL_OK")
</pallas_src>

<mosaic_0001>
module attributes {stable_mosaic.version = 11 : i64} {
  func.func @fidelity_kernel(%arg0: i32, %arg1: memref<8x128xf32, #tpu.memory_space<vmem>>, %arg2: memref<16x8xf32, #tpu.memory_space<vmem>>, %arg3: memref<16x1xf32, #tpu.memory_space<vmem>>, %arg4: memref<16x16xf32, #tpu.memory_space<vmem>>, %arg5: memref<16x1xf32, #tpu.memory_space<vmem>>, %arg6: memref<8x16xf32, #tpu.memory_space<vmem>>, %arg7: memref<8x1xf32, #tpu.memory_space<vmem>>, %arg8: memref<8x8xf32, #tpu.memory_space<vmem>>, %arg9: memref<48x8xf32, #tpu.memory_space<vmem>>, %arg10: memref<48x8xf32, #tpu.memory_space<vmem>>, %arg11: memref<16x16xf32, #tpu.memory_space<vmem>>, %arg12: memref<1x128xf32, #tpu.memory_space<vmem>>) attributes {dimension_semantics = [#tpu.dimension_semantics<parallel>], iteration_bounds = array<i64: 1>, scalar_prefetch = 0 : i64, scratch_operands = 0 : i64, tpu.core_type = #tpu.core_type<tc>, window_params = [{transform_indices = @transform_0, window_bounds = array<i64: 8, 128>}, {pipeline_mode = #tpu.pipeline_mode<synchronous>, transform_indices = @transform_1, window_bounds = array<i64: 16, 8>}, {pipeline_mode = #tpu.pipeline_mode<synchronous>, transform_indices = @transform_2, window_bounds = array<i64: 16, 1>}, {pipeline_mode = #tpu.pipeline_mode<synchronous>, transform_indices = @transform_3, window_bounds = array<i64: 16, 16>}, {pipeline_mode = #tpu.pipeline_mode<synchronous>, transform_indices = @transform_4, window_bounds = array<i64: 16, 1>}, {pipeline_mode = #tpu.pipeline_mode<synchronous>, transform_indices = @transform_5, window_bounds = array<i64: 8, 16>}, {pipeline_mode = #tpu.pipeline_mode<synchronous>, transform_indices = @transform_6, window_bounds = array<i64: 8, 1>}, {pipeline_mode = #tpu.pipeline_mode<synchronous>, transform_indices = @transform_7, window_bounds = array<i64: 8, 8>}, {pipeline_mode = #tpu.pipeline_mode<synchronous>, transform_indices = @transform_8, window_bounds = array<i64: 48, 8>}, {pipeline_mode = #tpu.pipeline_mode<synchronous>, transform_indices = @transform_9, window_bounds = array<i64: 48, 8>}, {pipeline_mode = #tpu.pipeline_mode<synchronous>, transform_indices = @transform_10, window_bounds = array<i64: 16, 16>}, {transform_indices = @transform_11, window_bounds = array<i64: 1, 128>}]} {
    %c0 = arith.constant 0 : index
    %c0_0 = arith.constant 0 : index
    %0 = vector.load %arg1[%c0, %c0_0] : memref<8x128xf32, #tpu.memory_space<vmem>>, vector<8x128xf32>
    %c0_1 = arith.constant 0 : index
    %c0_2 = arith.constant 0 : index
    %1 = vector.load %arg2[%c0_1, %c0_2] : memref<16x8xf32, #tpu.memory_space<vmem>>, vector<16x8xf32>
    %cst = arith.constant dense<0.000000e+00> : vector<16x128xf32>
    %2 = tpu.matmul %1, %0, %cst {dimension_numbers = #tpu.dot_dimension_numbers<[1], [0], [0], [1], [0, 0, 1, 1], [], []>} : vector<16x8xf32>, vector<8x128xf32>, vector<16x128xf32> -> vector<16x128xf32>
    %c0_3 = arith.constant 0 : index
    %c0_4 = arith.constant 0 : index
    %3 = vector.load %arg3[%c0_3, %c0_4] : memref<16x1xf32, #tpu.memory_space<vmem>>, vector<16x1xf32>
    %4 = vector.broadcast %3 : vector<16x1xf32> to vector<16x128xf32>
    %5 = arith.addf %2, %4 : vector<16x128xf32>
    %cst_5 = arith.constant 0.000000e+00 : f32
    %6 = vector.broadcast %cst_5 : f32 to vector<16x128xf32>
    %7 = arith.maximumf %5, %6 : vector<16x128xf32>
    %c0_6 = arith.constant 0 : index
    %c0_7 = arith.constant 0 : index
    %8 = vector.load %arg4[%c0_6, %c0_7] : memref<16x16xf32, #tpu.memory_space<vmem>>, vector<16x16xf32>
    %cst_8 = arith.constant dense<0.000000e+00> : vector<16x128xf32>
    %9 = tpu.matmul %8, %7, %cst_8 {dimension_numbers = #tpu.dot_dimension_numbers<[1], [0], [0], [1], [0, 0, 1, 1], [], []>} : vector<16x16xf32>, vector<16x128xf32>, vector<16x128xf32> -> vector<16x128xf32>
    %c0_9 = arith.constant 0 : index
    %c0_10 = arith.constant 0 : index
    %10 = vector.load %arg5[%c0_9, %c0_10] : memref<16x1xf32, #tpu.memory_space<vmem>>, vector<16x1xf32>
    %11 = vector.broadcast %10 : vector<16x1xf32> to vector<16x128xf32>
    %12 = arith.addf %9, %11 : vector<16x128xf32>
    %cst_11 = arith.constant 0.000000e+00 : f32
    %13 = vector.broadcast %cst_11 : f32 to vector<16x128xf32>
    %14 = arith.maximumf %12, %13 : vector<16x128xf32>
    %c0_12 = arith.constant 0 : index
    %c0_13 = arith.constant 0 : index
    %15 = vector.load %arg6[%c0_12, %c0_13] : memref<8x16xf32, #tpu.memory_space<vmem>>, vector<8x16xf32>
    %cst_14 = arith.constant dense<0.000000e+00> : vector<8x128xf32>
    %16 = tpu.matmul %15, %14, %cst_14 {dimension_numbers = #tpu.dot_dimension_numbers<[1], [0], [0], [1], [0, 0, 1, 1], [], []>} : vector<8x16xf32>, vector<16x128xf32>, vector<8x128xf32> -> vector<8x128xf32>
    %c0_15 = arith.constant 0 : index
    %c0_16 = arith.constant 0 : index
    %17 = vector.load %arg7[%c0_15, %c0_16] : memref<8x1xf32, #tpu.memory_space<vmem>>, vector<8x1xf32>
    %18 = vector.broadcast %17 : vector<8x1xf32> to vector<8x128xf32>
    %19 = arith.addf %16, %18 : vector<8x128xf32>
    %c0_17 = arith.constant 0 : index
    %c0_18 = arith.constant 0 : index
    %20 = vector.load %arg8[%c0_17, %c0_18] : memref<8x8xf32, #tpu.memory_space<vmem>>, vector<8x8xf32>
    %cst_19 = arith.constant dense<0.000000e+00> : vector<8x128xf32>
    %21 = tpu.matmul %20, %19, %cst_19 {dimension_numbers = #tpu.dot_dimension_numbers<[1], [0], [0], [1], [0, 0, 1, 1], [], []>} : vector<8x8xf32>, vector<8x128xf32>, vector<8x128xf32> -> vector<8x128xf32>
    %22 = arith.mulf %19, %21 : vector<8x128xf32>
    %c0_20 = arith.constant 0 : index
    %c0_21 = arith.constant 0 : index
    %23 = vector.load %arg9[%c0_20, %c0_21] : memref<48x8xf32, #tpu.memory_space<vmem>>, vector<48x8xf32>
    %cst_22 = arith.constant dense<0.000000e+00> : vector<48x128xf32>
    %24 = tpu.matmul %23, %19, %cst_22 {dimension_numbers = #tpu.dot_dimension_numbers<[1], [0], [0], [1], [0, 0, 1, 1], [], []>} : vector<48x8xf32>, vector<8x128xf32>, vector<48x128xf32> -> vector<48x128xf32>
    %c0_23 = arith.constant 0 : index
    %c0_24 = arith.constant 0 : index
    %25 = vector.load %arg10[%c0_23, %c0_24] : memref<48x8xf32, #tpu.memory_space<vmem>>, vector<48x8xf32>
    %cst_25 = arith.constant dense<0.000000e+00> : vector<48x128xf32>
    %26 = tpu.matmul %25, %22, %cst_25 {dimension_numbers = #tpu.dot_dimension_numbers<[1], [0], [0], [1], [0, 0, 1, 1], [], []>} : vector<48x8xf32>, vector<8x128xf32>, vector<48x128xf32> -> vector<48x128xf32>
    %27 = arith.addf %24, %26 : vector<48x128xf32>
    %28 = math.cos %27 : vector<48x128xf32>
    %29 = math.sin %27 : vector<48x128xf32>
    %30 = vector.extract_strided_slice %28 {offsets = [0, 0], sizes = [16, 128], strides = [1, 1]} : vector<48x128xf32> to vector<16x128xf32>
    %31 = vector.extract_strided_slice %28 {offsets = [16, 0], sizes = [16, 128], strides = [1, 1]} : vector<48x128xf32> to vector<16x128xf32>
    %32 = vector.extract_strided_slice %28 {offsets = [32, 0], sizes = [16, 128], strides = [1, 1]} : vector<48x128xf32> to vector<16x128xf32>
    %33 = vector.extract_strided_slice %29 {offsets = [0, 0], sizes = [16, 128], strides = [1, 1]} : vector<48x128xf32> to vector<16x128xf32>
    %34 = vector.extract_strided_slice %29 {offsets = [16, 0], sizes = [16, 128], strides = [1, 1]} : vector<48x128xf32> to vector<16x128xf32>
    %35 = vector.extract_strided_slice %29 {offsets = [32, 0], sizes = [16, 128], strides = [1, 1]} : vector<48x128xf32> to vector<16x128xf32>
    %c0_26 = arith.constant 0 : index
    %c0_27 = arith.constant 0 : index
    %36 = vector.load %arg11[%c0_26, %c0_27] : memref<16x16xf32, #tpu.memory_space<vmem>>, vector<16x16xf32>
    %cst_28 = arith.constant 2.500000e-01 : f32
    %37 = vector.broadcast %cst_28 : f32 to vector<16x128xf32>
    %38 = arith.mulf %37, %30 : vector<16x128xf32>
    %cst_29 = arith.constant 2.500000e-01 : f32
    %39 = vector.broadcast %cst_29 : f32 to vector<16x128xf32>
    %40 = arith.mulf %39, %33 : vector<16x128xf32>
    %cst_30 = arith.constant dense<0.000000e+00> : vector<16x128xf32>
    %41 = tpu.matmul %36, %38, %cst_30 {dimension_numbers = #tpu.dot_dimension_numbers<[1], [0], [0], [1], [0, 0, 1, 1], [], []>} : vector<16x16xf32>, vector<16x128xf32>, vector<16x128xf32> -> vector<16x128xf32>
    %cst_31 = arith.constant dense<0.000000e+00> : vector<16x128xf32>
    %42 = tpu.matmul %36, %40, %cst_31 {dimension_numbers = #tpu.dot_dimension_numbers<[1], [0], [0], [1], [0, 0, 1, 1], [], []>} : vector<16x16xf32>, vector<16x128xf32>, vector<16x128xf32> -> vector<16x128xf32>
    %43 = arith.mulf %41, %32 : vector<16x128xf32>
    %44 = arith.mulf %42, %35 : vector<16x128xf32>
    %45 = arith.subf %43, %44 : vector<16x128xf32>
    %46 = arith.mulf %41, %35 : vector<16x128xf32>
    %47 = arith.mulf %42, %32 : vector<16x128xf32>
    %48 = arith.addf %46, %47 : vector<16x128xf32>
    %cst_32 = arith.constant dense<0.000000e+00> : vector<16x128xf32>
    %49 = tpu.matmul %36, %45, %cst_32 {dimension_numbers = #tpu.dot_dimension_numbers<[1], [0], [0], [1], [0, 0, 1, 1], [], []>} : vector<16x16xf32>, vector<16x128xf32>, vector<16x128xf32> -> vector<16x128xf32>
    %cst_33 = arith.constant dense<0.000000e+00> : vector<16x128xf32>
    %50 = tpu.matmul %36, %48, %cst_33 {dimension_numbers = #tpu.dot_dimension_numbers<[1], [0], [0], [1], [0, 0, 1, 1], [], []>} : vector<16x16xf32>, vector<16x128xf32>, vector<16x128xf32> -> vector<16x128xf32>
    %51 = arith.mulf %49, %31 : vector<16x128xf32>
    %52 = arith.mulf %50, %34 : vector<16x128xf32>
    %53 = arith.addf %51, %52 : vector<16x128xf32>
    %54 = arith.mulf %50, %31 : vector<16x128xf32>
    %55 = arith.mulf %49, %34 : vector<16x128xf32>
    %56 = arith.subf %54, %55 : vector<16x128xf32>
    %cst_34 = arith.constant dense<0.000000e+00> : vector<128xf32>
    %57 = vector.multi_reduction <add>, %53, %cst_34 [0] : vector<16x128xf32> to vector<128xf32>
    %58 = vector.shape_cast %57 : vector<128xf32> to vector<1x128xf32>
    %cst_35 = arith.constant 2.500000e-01 : f32
    %59 = vector.broadcast %cst_35 : f32 to vector<1x128xf32>
    %60 = arith.mulf %59, %58 : vector<1x128xf32>
    %cst_36 = arith.constant dense<0.000000e+00> : vector<128xf32>
    %61 = vector.multi_reduction <add>, %56, %cst_36 [0] : vector<16x128xf32> to vector<128xf32>
    %62 = vector.shape_cast %61 : vector<128xf32> to vector<1x128xf32>
    %cst_37 = arith.constant 2.500000e-01 : f32
    %63 = vector.broadcast %cst_37 : f32 to vector<1x128xf32>
    %64 = arith.mulf %63, %62 : vector<1x128xf32>
    %65 = arith.mulf %60, %60 : vector<1x128xf32>
    %66 = arith.mulf %64, %64 : vector<1x128xf32>
    %67 = arith.addf %65, %66 : vector<1x128xf32>
    %c0_38 = arith.constant 0 : index
    %c0_39 = arith.constant 0 : index
    %68 = vector.load %arg12[%c0_38, %c0_39] : memref<1x128xf32, #tpu.memory_space<vmem>>, vector<1x128xf32>
    tpu.vector_store %arg12[%c0_38, %c0_39], %67 {strides = array<i32>} : memref<1x128xf32, #tpu.memory_space<vmem>>, vector<1x128xf32>,
    return
  }
  func.func @transform_0(%arg0: i32) -> (i32, i32) {
    %c0_i32 = arith.constant 0 : i32
    %c0_i32_0 = arith.constant 0 : i32
    return %c0_i32, %arg0 : i32, i32
  }
  func.func @transform_1(%arg0: i32) -> (i32, i32) {
    %c0_i32 = arith.constant 0 : i32
    %c0_i32_0 = arith.constant 0 : i32
    %c0_i32_1 = arith.constant 0 : i32
    return %c0_i32, %c0_i32_0 : i32, i32
  }
  func.func @transform_2(%arg0: i32) -> (i32, i32) {
    %c0_i32 = arith.constant 0 : i32
    %c0_i32_0 = arith.constant 0 : i32
    %c0_i32_1 = arith.constant 0 : i32
    return %c0_i32, %c0_i32_0 : i32, i32
  }
  func.func @transform_3(%arg0: i32) -> (i32, i32) {
    %c0_i32 = arith.constant 0 : i32
    %c0_i32_0 = arith.constant 0 : i32
    %c0_i32_1 = arith.constant 0 : i32
    return %c0_i32, %c0_i32_0 : i32, i32
  }
  func.func @transform_4(%arg0: i32) -> (i32, i32) {
    %c0_i32 = arith.constant 0 : i32
    %c0_i32_0 = arith.constant 0 : i32
    %c0_i32_1 = arith.constant 0 : i32
    return %c0_i32, %c0_i32_0 : i32, i32
  }
  func.func @transform_5(%arg0: i32) -> (i32, i32) {
    %c0_i32 = arith.constant 0 : i32
    %c0_i32_0 = arith.constant 0 : i32
    %c0_i32_1 = arith.constant 0 : i32
    return %c0_i32, %c0_i32_0 : i32, i32
  }
  func.func @transform_6(%arg0: i32) -> (i32, i32) {
    %c0_i32 = arith.constant 0 : i32
    %c0_i32_0 = arith.constant 0 : i32
    %c0_i32_1 = arith.constant 0 : i32
    return %c0_i32, %c0_i32_0 : i32, i32
  }
  func.func @transform_7(%arg0: i32) -> (i32, i32) {
    %c0_i32 = arith.constant 0 : i32
    %c0_i32_0 = arith.constant 0 : i32
    %c0_i32_1 = arith.constant 0 : i32
    return %c0_i32, %c0_i32_0 : i32, i32
  }
  func.func @transform_8(%arg0: i32) -> (i32, i32) {
    %c0_i32 = arith.constant 0 : i32
    %c0_i32_0 = arith.constant 0 : i32
    %c0_i32_1 = arith.constant 0 : i32
    return %c0_i32, %c0_i32_0 : i32, i32
  }
  func.func @transform_9(%arg0: i32) -> (i32, i32) {
    %c0_i32 = arith.constant 0 : i32
    %c0_i32_0 = arith.constant 0 : i32
    %c0_i32_1 = arith.constant 0 : i32
    return %c0_i32, %c0_i32_0 : i32, i32
  }
  func.func @transform_10(%arg0: i32) -> (i32, i32) {
    %c0_i32 = arith.constant 0 : i32
    %c0_i32_0 = arith.constant 0 : i32
    %c0_i32_1 = arith.constant 0 : i32
    return %c0_i32, %c0_i32_0 : i32, i32
  }
  func.func @transform_11(%arg0: i32) -> (i32, i32) {
    %c0_i32 = arith.constant 0 : i32
    %c0_i32_0 = arith.constant 0 : i32
    return %c0_i32, %arg0 : i32, i32
  }
}

</mosaic_0001>

<bundles_post_ra>
// kernel: tpu_custom_call.1
= control target key start
LH: loop header
LB: loop body
LE: loop exit
PB: predicated region body
PF: predicated region fallthrough
CT: control target
= control target key end

     0   :  { %vm54_vm0 = vcmask 64512   ;;  %v2513_v4 = vmov 0   ;;  %s3063_s0 = inlined_call_operand.vmem [shape: f32[8,128], index: 0, kind: input, shape index: {}]   ;;  %s3064_s1 = inlined_call_operand.vmem [shape: f32[16,8], index: 1, kind: input, shape index: {}]   ;;  %s3065_s2 = inlined_call_operand.vmem [shape: f32[16,1], index: 2, kind: input, shape index: {}]   ;;  %s3066_s3 = inlined_call_operand.vmem [shape: f32[16,16], index: 3, kind: input, shape index: {}]   ;;  %s3067_s4 = inlined_call_operand.vmem [shape: f32[16,1], index: 4, kind: input, shape index: {}]   ;;  %s3068_s5 = inlined_call_operand.vmem [shape: f32[8,16], index: 5, kind: input, shape index: {}]   ;;  %s3069_s6 = inlined_call_operand.vmem [shape: f32[8,1], index: 6, kind: input, shape index: {}]   ;;  %s3070_s7 = inlined_call_operand.vmem [shape: f32[8,8], index: 7, kind: input, shape index: {}]   ;;  %s3071_s8 = inlined_call_operand.vmem [shape: f32[48,8], index: 8, kind: input, shape index: {}]   ;;  %s3072_s9 = inlined_call_operand.vmem [shape: f32[48,8], index: 9, kind: input, shape index: {}]   ;;  %s3073_s10 = inlined_call_operand.vmem [shape: f32[16,16], index: 10, kind: input, shape index: {}]   ;;  %s3074_s11 = inlined_call_operand.hbm [shape: f32[1,128], index: 11, kind: output, shape index: {}]  }
   0x1   :  { %v39_v0 = vld [vmem:[%s3063_s0] sm:$0xff]  ;;  %v41_v2 = vld [vmem:[%s3064_s1 + $0x8] sm:$0xff]  ;;  %2465 = vset.pattern.permute.xlu0 %v2513_v4 }
   0x2   :  { %v40_v1 = vld [vmem:[%s3064_s1] sm:$0xff]  ;;  %2357 = vmatprep.subr.mxu0 %v39_v0  ;;  %v43_v3 = vld [vmem:[%s3065_s2 + $0x8] sm:$0xff] }
   0x3   :  { %2359 = vmatprep.mubr.msk.f32.mxu0 %vm54_vm0, %v40_v1  ;;  %2358 = vmatpush3.msra.mxu0 %v39_v0 }
   0x4   :  { %16 = vsyncpa [#allocation3], 0  ;;  %2360 = vmatmul.mubr.msk.f32.vlgmr.msra.gmra.mxu0 %vm54_vm0, %v41_v2  ;;  %51 = vperm.xlu0 %2465, %v43_v3   ;;  %v42_v5 = vld [vmem:[%s3065_s2] sm:$0xff]  ;;  %vm152_vm1 = vcmask 130048   ;;  %v141_v8 = vld [vmem:[%s3067_s4 + $0x8] sm:$0xff]  ;;  %v2514_v19 = vmov 0.0  }
   0x5   :  { %2466 = vset.pattern.permute.xlu1 %v2513_v4  ;;  %v237_v6 = vld [vmem:[%s3069_s6] sm:$0xff]  ;;  %v139_v18 = vld [vmem:[%s3066_s3 + $0x8] sm:$0xff]  ;;  %2369 = vmatprep.subr.mxu0 %v2514_v19  ;;  %vm2515_vm2 = vmmov 0   ;;  %v393_v37 = vld [vmem:[%s3071_s8 + $0x10] sm:$0xff] }
   0x6   :  { %v138_v7 = vld [vmem:[%s3066_s3] sm:$0xff]  ;;  %149 = vperm.xlu1 %2466, %v141_v8   ;;  %2373 = vmatprep.mubr.msk.f32.mxu0 %vm2515_vm2, %v2514_v19  ;;  %v392_v35 = vld [vmem:[%s3071_s8 + $0x8] sm:$0xff]  ;;  %v394_v38 = vld [vmem:[%s3071_s8 + $0x18] sm:$0xff] }
   0x7   :  { %2366 = vmatprep.mubr.msk.f32.mxu1 %vm152_vm1, %v138_v7  ;;  %v140_v9 = vld [vmem:[%s3067_s4] sm:$0xff]  ;;  %v396_v40 = vld [vmem:[%s3071_s8 + $0x28] sm:$0xff]  ;;  %v399_v45 = vld [vmem:[%s3072_s9 + $0x10] sm:$0xff] }
   0x8   :  { %46 = vperm.xlu0 %2465, %v42_v5   ;;  %v236_v28 = vld [vmem:[%s3068_s5] sm:$0xff]  ;;  %v398_v44 = vld [vmem:[%s3072_s9 + $0x8] sm:$0xff]  ;;  %v400_v46 = vld [vmem:[%s3072_s9 + $0x18] sm:$0xff] }
   0x9   :  { %v316_v32 = vld [vmem:[%s3070_s7] sm:$0xff]  ;;  %v402_v48 = vld [vmem:[%s3072_s9 + $0x28] sm:$0xff] }
   0xa   :  { %144 = vperm.xlu1 %2466, %v140_v9   ;;  %v391_v34 = vld [vmem:[%s3071_s8] sm:$0xff] }
   0xb   :  { %v397_v36 = vld [vmem:[%s3072_s9] sm:$0xff] }
   0xc   :  { %240 = vperm.xlu0 %2465, %v237_v6   ;;  %v395_v39 = vld [vmem:[%s3071_s8 + $0x20] sm:$0xff] }
   0xd   :  { %v401_v47 = vld [vmem:[%s3072_s9 + $0x20] sm:$0xff] }
   0xe   :  { %v2676_v49 = vld [vmem:[%s3073_s10] sm:$0xff] }
  0x7f   :  { %v52_v10 = vpop.permute.xlu0 %51 }
  0x81   :  { %v150_v20 = vpop.permute.xlu1 %149 }
  0x83   :  { %v47_v13 = vpop.permute.xlu0 %46 }
  0x85   :  { %v145_v23 = vpop.permute.xlu1 %144 }
  0x87   :  { %v241_v29 = vpop.permute.xlu0 %240 }
  0xc4   :  { %v2361_v11 = vpop.f32.mrf.mxu0 }
  0xc5   :  { %v133_v12 = vadd.f32 %v2361_v11, %v52_v10 }
  0xc6   :  { %v127_v14 = vpop.f32.mrf.mxu0 }
  0xc7   :  { %v137_v15 = vmax.f32 %v133_v12, 0.0  ;;  %v128_v16 = vadd.f32 %v127_v14, %v47_v13 }
  0xc9   :  { %v136_v17 = vmax.f32 %v128_v16, 0.0  ;;  %2362 = vmatprep.subr.mxu1 %v137_v15  ;;  %v2516_v16 = vmov 683565275  }
  0xca   :  { %2363 = vmatpush3.msra.mxu1 %v137_v15 }
  0xcb   :  { %2364 = vmatprep.subr.mxu1 %v136_v17 }
  0xcc   :  { %2365 = vmatpush3.msra.mxu1 %v136_v17 }
  0xcd   :  { %2367 = vmatmul.mubr.msk.f32.vlgmr.msra.gmra.mxu1 %vm152_vm1, %v139_v18  ;;  %2376 = vmatprep.subr.mxu1 %v2514_v19 }
  0xce   :  { %2378 = vmatprep.mubr.msk.f32.mxu1 %vm2515_vm2, %v2514_v19 }
 0x18d   :  { %v2368_v21 = vpop.f32.mrf.mxu1 }
 0x18e   :  { %v231_v22 = vadd.f32 %v2368_v21, %v150_v20  ;;  %v2518_v21 = vmov 2131351028  }
 0x18f   :  { %v225_v24 = vpop.f32.mrf.mxu1 }
 0x190   :  { %v235_v25 = vmax.f32 %v231_v22, 0.0  ;;  %v226_v26 = vadd.f32 %v225_v24, %v145_v23  ;;  %v2519_v23 = vmov 2102212464  }
 0x192   :  { %v234_v27 = vmax.f32 %v226_v26, 0.0  ;;  %2370 = vmatpush3.msra.mxu0 %v235_v25  ;;  %v2520_v25 = vmov 920167782  }
 0x193   :  { %2371 = vmatprep.subr.mxu0 %v2514_v19  ;;  %v2517_v19 = vmov 2475754826  }
 0x194   :  { %2372 = vmatpush3.msra.mxu0 %v234_v27 }
 0x195   :  { %2374 = vmatmul.mubr.msk.f32.vlgmr.msra.gmra.mxu0 %vm152_vm1, %v236_v28 }
 0x196   :  { %2383 = vmatprep.mubr.msk.f32.mxu0 %vm54_vm0, %v397_v36 }
 0x255   :  { %v312_v30 = vpop.f32.mrf.mxu0 }
 0x256   :  { %v313_v31 = vadd.f32 %v312_v30, %v241_v29 }
 0x257   :  { %v2375_v33 = vpop.f32.mrf.mxu0 }
 0x258   :  { %2377 = vmatpush3.msra.mxu1 %v313_v31 }
 0x259   :  { %2379 = vmatmul.mubr.msk.f32.vlgmr.msra.gmra.mxu1 %vm54_vm0, %v316_v32  ;;  %2392 = vmatprep.subr.mxu1 %v313_v31  ;;  %v2521_v32 = vmov 1326507024  }
 0x25a   :  { %2393 = vmatpush3.msra.mxu1 %v313_v31  ;;  %2394 = vmatprep.mubr.msk.f32.mxu1 %vm54_vm0, %v391_v34 }
 0x25d   :  { %2395 = vmatmul.mubr.msk.f32.vlgmr.msra.gmra.mxu1 %vm54_vm0, %v392_v35 }
 0x25e   :  { %2397 = vmatprep.mubr.msk.f32.mxu1 %vm54_vm0, %v393_v37 }
 0x261   :  { %2398 = vmatmul.mubr.msk.f32.gmra.mxu1 %vm54_vm0, %v394_v38 }
 0x262   :  { %2400 = vmatprep.mubr.msk.f32.mxu1 %vm54_vm0, %v395_v39 }
 0x265   :  { %2401 = vmatmul.mubr.msk.f32.gmra.mxu1 %vm54_vm0, %v396_v40 }
 0x266   :  { %2414 = vmatprep.mubr.msk.f32.mxu1 %vm152_vm1, %v2676_v49 }
 0x319   :  { %v386_v41 = vpop.f32.mrf.mxu1 }
 0x31a   :  { %v390_v42 = vmul.f32 %v386_v41, %v313_v31 }
 0x31b   :  { %v2380_v43 = vpop.f32.mrf.mxu1 }
 0x31c   :  { %2381 = vmatprep.subr.mxu0 %v390_v42 }
 0x31d   :  { %2382 = vmatpush3.msra.mxu0 %v390_v42  ;;  %v2396_v50 = vpop.f32.mrf.mxu1 }
 0x31e   :  { %2384 = vmatmul.mubr.msk.f32.vlgmr.msra.gmra.mxu0 %vm54_vm0, %v398_v44 }
 0x31f   :  { %2386 = vmatprep.mubr.msk.f32.mxu0 %vm54_vm0, %v399_v45  ;;  %v600_v51 = vpop.f32.mrf.mxu1 }
 0x321   :  { %v2399_v53 = vpop.f32.mrf.mxu1 }
 0x322   :  { %2387 = vmatmul.mubr.msk.f32.gmra.mxu0 %vm54_vm0, %v400_v46 }
 0x323   :  { %2389 = vmatprep.mubr.msk.f32.mxu0 %vm54_vm0, %v401_v47  ;;  %v610_v60 = vpop.f32.mrf.mxu1 }
 0x326   :  { %2390 = vmatmul.mubr.msk.f32.gmra.mxu0 %vm54_vm0, %v402_v48 }
 0x327   :  { %2407 = vmatprep.mubr.msk.f32.mxu0 %vm152_vm1, %v2676_v49 }
 0x3de   :  { %v2385_v52 = vpop.f32.mrf.mxu0 }
 0x3df   :  { %v2682_v54 = vadd.f32 %v2396_v50, %v2385_v52 }
 0x3e0   :  { %v487_v55 = vpop.f32.mrf.mxu0 }
 0x3e1   :  { %v732_v56 = vand.u32 2147483647, %v2682_v54  ;;  %v735_v57 = vand.u32 2139095040, %v2682_v54  ;;  %v2686_v58 = vadd.f32 %v600_v51, %v487_v55  ;;  %vm734_vm2 = vcmp.lt.s32.totalorder %v2682_v54, 0 }
 0x3e2   :  { %v2388_v59 = vpop.f32.mrf.mxu0 }
 0x3e3   :  { %v736_v61 = vshrl.u32 %v735_v57, 23  ;;  %v739_v62 = vand.u32 8388607, %v732_v56  ;;  %v632_v63 = vand.u32 2139095040, %v2686_v58  ;;  %v2691_v0 = vadd.f32 %v2399_v53, %v2388_v59 }
 0x3e4   :  { %v497_v1 = vpop.f32.mrf.mxu0  ;;  %v629_v3 = vand.u32 2147483647, %v2686_v58 }
 0x3e5   :  { %v2263_v2 = vadd.s32 4294967169, %v736_v61  ;;  %v2694_v4 = vadd.f32 %v610_v60, %v497_v1  ;;  %v633_v5 = vshrl.u32 %v632_v63, 23  ;;  %v740_v7 = vor.u32 8388608, %v739_v62 }
 0x3e6   :  { %v636_v9 = vand.u32 8388607, %v629_v3 }
 0x3e7   :  { %v742_v6 = vadd.s32 1, %v2263_v2  ;;  %v2259_v8 = vadd.s32 4294967169, %v633_v5  ;;  %v2698_v14 = vshll.u32 %v740_v7, 8 }
 0x3e8   :  { %v637_v18 = vor.u32 8388608, %v636_v9 }
 0x3e9   :  { %vm743_vm3 = vcmp.gt.s32.totalorder %v742_v6, 0  ;;  %v639_v11 = vadd.s32 1, %v2259_v8 }
 0x3ea   :  { %v744_v10 = vsel %vm743_vm3, %v742_v6, 0  ;;  %v677_v52 = vshll.u32 %v637_v18, 8  ;;  %vm733_vm3 = vcmp.le.f32.partialorder %v732_v56, 0.7853982 }
 0x3eb   :  { %v745_v12 = vshrl.u32 %v744_v10, 5  ;;  %v746_v13 = vand.u32 31, %v744_v10  ;;  %vm640_vm4 = vcmp.gt.s32.totalorder %v639_v11, 0 }
 0x3ec   :  { %v641_v37 = vsel %vm640_vm4, %v639_v11, 0  ;;  %vm631_vm4 = vcmp.lt.s32.totalorder %v2686_v58, 0 }
 0x3ed   :  { %v747_v15 = vsub.s32 32, %v746_v13  ;;  %v749_v17 = vshll.u32 %v2516_v16, %v746_v13  ;;  %v752_v20 = vshll.u32 %v2517_v19, %v746_v13  ;;  %v755_v22 = vshll.u32 %v2518_v21, %v746_v13 }
 0x3ee   :  { %v758_v24 = vshll.u32 %v2519_v23, %v746_v13  ;;  %v761_v26 = vshll.u32 %v2520_v25, %v746_v13  ;;  %vm764_vm5 = vcmp.lt.s32.totalorder %v745_v12, 1  ;;  %vm766_vm6 = vcmp.lt.s32.totalorder %v745_v12, 3 }
 0x3ef   :  { %v750_v27 = vshrl.u32 %v2517_v19, %v747_v15  ;;  %v753_v28 = vshrl.u32 %v2518_v21, %v747_v15  ;;  %v756_v29 = vshrl.u32 %v2519_v23, %v747_v15  ;;  %v748_v30 = vshrl.u32 %v2516_v16, %v747_v15 }
 0x3f0   :  { %v759_v31 = vshrl.u32 %v2520_v25, %v747_v15  ;;  %v762_v33 = vshrl.u32 %v2521_v32, %v747_v15  ;;  %vm767_vm7 = vcmp.lt.s32.totalorder %v745_v12, 4  ;;  %v643_v40 = vand.u32 31, %v641_v37 }
 0x3f1   :  { %v751_v34 = vor.u32 %v750_v27, %v749_v17  ;;  %v754_v35 = vor.u32 %v753_v28, %v752_v20  ;;  %v757_v36 = vor.u32 %v756_v29, %v755_v22  ;;  %vm765_vm8 = vcmp.lt.s32.totalorder %v745_v12, 2 }
 0x3f2   :  { %v760_v38 = vor.u32 %v759_v31, %v758_v24  ;;  %v763_v39 = vor.u32 %v762_v33, %v761_v26  ;;  %v644_v48 = vsub.s32 32, %v643_v40  ;;  %v642_v59 = vshrl.u32 %v641_v37, 5 }
 0x3f3   :  { %v768_v41 = vsel %vm764_vm5, %v748_v30, %v751_v34  ;;  %v769_v42 = vsel %vm767_vm7, %v757_v36, 2102212464  ;;  %v772_v43 = vsel %vm764_vm5, %v751_v34, %v754_v35  ;;  %v776_v44 = vsel %vm764_vm5, %v754_v35, %v757_v36 }
 0x3f4   :  { %v770_v45 = vsel %vm766_vm6, %v754_v35, %v769_v42  ;;  %v773_v46 = vsel %vm767_vm7, %v760_v38, 920167782  ;;  %v777_v47 = vsel %vm767_vm7, %v763_v39, 1326507024  ;;  %v646_v1 = vshll.u32 %v2516_v16, %v643_v40 }
 0x3f5   :  { %v774_v50 = vsel %vm766_vm6, %v757_v36, %v773_v46  ;;  %v778_v51 = vsel %vm766_vm6, %v760_v38, %v777_v47  ;;  %v771_v53 = vsel %vm765_vm8, %v768_v41, %v770_v45  ;;  %v647_v2 = vshrl.u32 %v2517_v19, %v644_v48 }
 0x3f6   :  { %v775_v55 = vsel %vm765_vm8, %v772_v43, %v774_v50  ;;  %v779_v57 = vsel %vm765_vm8, %v776_v44, %v778_v51  ;;  %v649_v5 = vshll.u32 %v2517_v19, %v643_v40  ;;  %v650_v6 = vshrl.u32 %v2518_v21, %v644_v48 }
 0x3f7   :  { %v2719_v60 = vmul.u32.u64.low %v2698_v14, %v779_v57  ;;  %v2720_v61 = vmul.u32.u64.high %v2698_v14, %v779_v57, %v2719_v60  ;;  %v2723_v62 = vmul.u32.u64.low %v2698_v14, %v775_v55  ;;  %v2724_v63 = vmul.u32.u64.high %v2698_v14, %v775_v55, %v2723_v62 }
 0x3f8   :  { %v652_v7 = vshll.u32 %v2518_v21, %v643_v40  ;;  %v653_v8 = vshrl.u32 %v2519_v23, %v644_v48  ;;  %v655_v9 = vshll.u32 %v2519_v23, %v643_v40  ;;  %v656_v10 = vshrl.u32 %v2520_v25, %v644_v48 }
 0x3f9   :  { %v648_v11 = vor.u32 %v647_v2, %v646_v1  ;;  %v651_v12 = vor.u32 %v650_v6, %v649_v5  ;;  %v658_v13 = vshll.u32 %v2520_v25, %v643_v40  ;;  %v659_v15 = vshrl.u32 %v2521_v32, %v644_v48 }
 0x3fa   :  { %v787_v17 = vmul.u32 %v2698_v14, %v771_v53  ;;  %vm789_vm9 = vc.u32 %v2720_v61, %v2723_v62  ;;  %v790_v18 = vadd.s32 1, %v2724_v63  ;;  %v654_v20 = vor.u32 %v653_v8, %v652_v7 }
 0x3fb   :  { %v645_v22 = vshrl.u32 %v2516_v16, %v644_v48  ;;  %v657_v24 = vor.u32 %v656_v10, %v655_v9  ;;  %v660_v26 = vor.u32 %v659_v15, %v658_v13  ;;  %vm661_vm10 = vcmp.lt.s32.totalorder %v642_v59, 1 }
 0x3fc   :  { %v791_v27 = vsel %vm789_vm9, %v790_v18, %v2724_v63  ;;  %vm663_vm11 = vcmp.lt.s32.totalorder %v642_v59, 3  ;;  %vm664_vm12 = vcmp.lt.s32.totalorder %v642_v59, 4  ;;  %v669_v28 = vsel %vm661_vm10, %v648_v11, %v651_v12 }
 0x3fd   :  { %v792_v29 = vadd.s32 %v791_v27, %v787_v17  ;;  %v666_v30 = vsel %vm664_vm12, %v654_v20, 2102212464  ;;  %v670_v31 = vsel %vm664_vm12, %v657_v24, 920167782  ;;  %v673_v14 = vsel %vm661_vm10, %v651_v12, %v654_v20 }
 0x3fe   :  { %vm662_vm13 = vcmp.lt.s32.totalorder %v642_v59, 2  ;;  %v665_v33 = vsel %vm661_vm10, %v645_v22, %v648_v11  ;;  %v671_v34 = vsel %vm663_vm11, %v654_v20, %v670_v31  ;;  %v674_v35 = vsel %vm664_vm12, %v660_v26, 1326507024 }
 0x3ff   :  { %v793_v36 = vadd.s32 536870912, %v792_v29  ;;  %v667_v37 = vsel %vm663_vm11, %v651_v12, %v666_v30  ;;  %v672_v38 = vsel %vm662_vm13, %v669_v28, %v671_v34  ;;  %v675_v39 = vsel %vm663_vm11, %v657_v24, %v674_v35 }
 0x400   :  { %v676_v40 = vsel %vm662_vm13, %v673_v14, %v675_v39  ;;  %v2743_v41 = vmul.u32.u64.low %v677_v52, %v672_v38  ;;  %v2744_v42 = vmul.u32.u64.high %v677_v52, %v672_v38, %v2743_v41  ;;  %v668_v46 = vsel %vm662_vm13, %v665_v33, %v667_v37 }
 0x401   :  { %v794_v43 = vshrl.u32 %v793_v36, 30  ;;  %v2746_v44 = vmul.u32.u64.low %v677_v52, %v676_v40  ;;  %v2747_v45 = vmul.u32.u64.high %v677_v52, %v676_v40, %v2746_v44  ;;  %v684_v51 = vmul.u32 %v677_v52, %v668_v46 }
 0x402   :  { %v687_v48 = vadd.s32 1, %v2744_v42  ;;  %v788_v8 = vadd.s32 %v2723_v62, %v2720_v61  ;;  %vm630_vm5 = vcmp.le.f32.partialorder %v629_v3, 0.7853982  ;;  %vm824_vm12 = vweird.f32 %v2682_v54 }
 0x403   :  { %v795_v47 = vshll.u32 %v794_v43, 30  ;;  %vm686_vm14 = vc.u32 %v2747_v45, %v2743_v41  ;;  %v685_v30 = vadd.s32 %v2743_v41, %v2747_v45  ;;  %v818_v35 = vsub.s32 4, %v794_v43 }
 0x404   :  { %v688_v53 = vsel %vm686_vm14, %v687_v48, %v2744_v42 }
 0x405   :  { %v796_v50 = vsub.s32 %v792_v29, %v795_v47  ;;  %v689_v57 = vadd.s32 %v688_v53, %v684_v51  ;;  %v819_v41 = vsel %vm734_vm2, %v818_v35, %v794_v43 }
 0x406   :  { %v821_v46 = vsel %vm733_vm3, 0, %v819_v41 }
 0x407   :  { %v798_v55 = vsub.s32 0, %v796_v50  ;;  %v690_v60 = vadd.s32 536870912, %v689_v57  ;;  %v1444_v48 = vadd.s32 3, %v821_v46  ;;  %v825_v53 = vand.u32 3, %v821_v46 }
 0x409   :  { %v2264_v59 = vmin.u32 %v798_v55, %v796_v50  ;;  %v691_v1 = vshrl.u32 %v690_v60, 30  ;;  %v1445_v55 = vand.u32 3, %v1444_v48  ;;  %vm826_vm6 = vcmp.lt.s32.totalorder %v825_v53, 2 }
 0x40a   :  { %vm830_vm7 = vcmp.eq.s32.totalorder %v825_v53, 2  ;;  %vm827_vm9 = vcmp.eq.s32.totalorder %v825_v53, 0 }
 0x40b   :  { %v800_v63 = vclz %v2264_v59  ;;  %v692_v5 = vshll.u32 %v691_v1, 30  ;;  %vm1450_vm8 = vcmp.eq.s32.totalorder %v1445_v55, 2  ;;  %vm1447_vm10 = vcmp.eq.s32.totalorder %v1445_v55, 0 }
 0x40c   :  { %vm1446_vm11 = vcmp.lt.s32.totalorder %v1445_v55, 2 }
 0x40d   :  { %v2265_v2 = vadd.s32 4294967294, %v800_v63  ;;  %v693_v6 = vsub.s32 %v689_v57, %v692_v5 }
 0x40f   :  { %vm2266_vm15 = vcmp.lt.s32.totalorder %v2265_v2, 0  ;;  %v695_v10 = vsub.s32 0, %v693_v6 }
 0x410   :  { %v803_v7 = vsel %vm2266_vm15, 0, %v2265_v2 }
 0x411   :  { %v804_v9 = vsub.s32 32, %v803_v7  ;;  %v808_v52 = vsub.s32 4294967266, %v803_v7  ;;  %v805_v11 = vshll.u32 %v796_v50, %v803_v7  ;;  %v2260_v15 = vmin.u32 %v695_v10, %v693_v6 }
 0x412   :  { %v715_v50 = vsub.s32 4, %v691_v1 }
 0x413   :  { %v806_v12 = vshrl.u32 %v788_v8, %v804_v9  ;;  %v809_v13 = vadd.s32 127, %v808_v52  ;;  %v697_v20 = vclz %v2260_v15 }
 0x414   :  { %v716_v43 = vsel %vm631_vm4, %v715_v50, %v691_v1 }
 0x415   :  { %v807_v17 = vor.u32 %v806_v12, %v805_v11  ;;  %v810_v18 = vshll.u32 %v809_v13, 23  ;;  %v2261_v24 = vadd.s32 4294967294, %v697_v20  ;;  %v718_v63 = vsel %vm630_vm5, 0, %v716_v43 }
 0x416   :  { %v1340_v8 = vadd.s32 3, %v718_v63  ;;  %v722_v13 = vand.u32 3, %v718_v63 }
 0x417   :  { %v811_v22 = vor.u32 4788187, %v810_v18  ;;  %v814_v27 = vcvt.s32.f32 %v807_v17  ;;  %vm2262_vm0 = vcmp.lt.s32.totalorder %v2261_v24, 0 }
 0x418   :  { %v700_v28 = vsel %vm2262_vm0, 0, %v2261_v24  ;;  %v1341_v15 = vand.u32 3, %v1340_v8  ;;  %vm727_vm13 = vcmp.eq.s32.totalorder %v722_v13, 2  ;;  %vm724_vm15 = vcmp.eq.s32.totalorder %v722_v13, 0 }
 0x419   :  { %v812_v26 = vand.u32 2147483647, %v811_v22  ;;  %v701_v61 = vsub.s32 32, %v700_v28  ;;  %v705_v62 = vsub.s32 4294967266, %v700_v28  ;;  %v702_v14 = vshll.u32 %v693_v6, %v700_v28 }
 0x41a   :  { %vm1346_vm14 = vcmp.eq.s32.totalorder %v1341_v15, 2  ;;  %vm1343_vm0 = vcmp.eq.s32.totalorder %v1341_v15, 0 }
 0x41b   :  { %v815_v29 = vmul.f32 %v814_v27, %v812_v26  ;;  %v703_v33 = vshrl.u32 %v685_v30, %v701_v61  ;;  %v706_v34 = vadd.s32 127, %v705_v62 }
 0x41d   :  { %v816_v31 = vxor.u32 2147483648, %v815_v29  ;;  %v704_v37 = vor.u32 %v703_v33, %v702_v14  ;;  %v707_v38 = vshll.u32 %v706_v34, 23  ;;  %v2768_v14 = vld [vmem:[%s3073_s10 + $0x8] sm:$0xff]  ;;  %v2402_v33 = vpop.f32.mrf.mxu1  ;;  %s2522_s10 = smov [#allocation2]  }
 0x41e   :  { %s2233_s15 = sshll.u32 %s2522_s10, 4  ;;  %s2234_s15 = int_to_ptr.vmem [resolvable:$true] %s2233_s15 }
 0x41f   :  { %v817_v36 = vsel %vm734_vm2, %v816_v31, %v815_v29  ;;  %v708_v40 = vor.u32 4788187, %v707_v38  ;;  %v711_v44 = vcvt.s32.f32 %v704_v37  ;;  %vm723_vm2 = vcmp.lt.s32.totalorder %v722_v13, 2  ;;  %s2491_s16 = scalar_lea.vmem %s2234_s15, 16  ;;  %s2495_s17 = scalar_lea.vmem %s2234_s15, 32 }
 0x420   :  { %v820_v39 = vsel %vm733_vm3, %v2682_v54, %v817_v36  ;;  %vm1342_vm3 = vcmp.lt.s32.totalorder %v1341_v15, 2  ;;  %v620_v36 = vpop.f32.mrf.mxu1  ;;  %p2492_p0 = scmp.ne.s32.totalorder %s2234_s15, %s2491_s16  ;;  %p2496_p1 = scmp.lt.s32.totalorder %s2234_s15, %s2234_s15 }
 0x421   :  { %2467 = vcosq.f32 %v820_v39  ;;  %v709_v42 = vand.u32 2147483647, %v708_v40  ;;  %p2497_p2 = scmp.lt.s32.totalorder %s2495_s17, %s2491_s16 }
 0x422   :  { %2469 = vsinq.f32 %v820_v39 }
 0x423   :  { %v712_v45 = vmul.f32 %v711_v44, %v709_v42  ;;  %p2498_p3 = por %p2497_p2, %p2496_p1 }
 0x425   :  { %v713_v47 = vxor.u32 2147483648, %v712_v45  ;;  %p2499_p4 = pnand %p2498_p3, %p2492_p0 }
 0x427   :  { %v714_v56 = vsel %vm631_vm4, %v713_v47, %v712_v45  ;;  %vm721_vm4 = vweird.f32 %v2686_v58 }
 0x428   :  { %v717_v51 = vsel %vm630_vm5, %v2686_v58, %v714_v56  ;;  %v2391_v58 = vpop.f32.mrf.mxu0 }
 0x429   :  { %2471 = vcosq.f32 %v717_v51  ;;  %v2778_v34 = vadd.f32 %v2402_v33, %v2391_v58 }
 0x42a   :  { %2473 = vsinq.f32 %v717_v51  ;;  %v507_v35 = vpop.f32.mrf.mxu0 }
 0x42b   :  { %v2780_v37 = vadd.f32 %v620_v36, %v507_v35  ;;  %v1147_v38 = vand.u32 2139095040, %v2778_v34  ;;  %v1144_v56 = vand.u32 2147483647, %v2778_v34 }
 0x42d   :  { %v1044_v39 = vand.u32 2139095040, %v2780_v37  ;;  %v1148_v40 = vshrl.u32 %v1147_v38, 23  ;;  %v1151_v55 = vand.u32 8388607, %v1144_v56 }
 0x42e   :  { %v2468_v57 = vpop.eup %2467 }
 0x42f   :  { %v2470_v59 = vpop.eup %2469  ;;  %v831_v60 = vxor.u32 2147483648, %v2468_v57  ;;  %v1045_v41 = vshrl.u32 %v1044_v39, 23  ;;  %v2279_v42 = vadd.s32 4294967169, %v1148_v40 }
 0x430   :  { %v828_v2 = vxor.u32 2147483648, %v2470_v59 }
 0x431   :  { %v832_v5 = vsel %vm830_vm7, %v831_v60, %v2470_v59  ;;  %v1452_v3 = vsel %vm1450_vm8, %v831_v60, %v2470_v59  ;;  %v2275_v44 = vadd.s32 4294967169, %v1045_v41  ;;  %v1154_v45 = vadd.s32 1, %v2279_v42 }
 0x432   :  { %v829_v6 = vsel %vm827_vm9, %v2468_v57, %v828_v2  ;;  %v1449_v7 = vsel %vm1447_vm10, %v2468_v57, %v828_v2  ;;  %v1041_v2 = vand.u32 2147483647, %v2780_v37 }
 0x433   :  { %v833_v9 = vsel %vm826_vm6, %v829_v6, %v832_v5  ;;  %v1453_v1 = vsel %vm1446_vm11, %v1449_v7, %v1452_v3  ;;  %v1051_v46 = vadd.s32 1, %v2275_v44  ;;  %vm1155_vm5 = vcmp.gt.s32.totalorder %v1154_v45, 0 }
 0x434   :  { %v834_v52 = vsel %vm824_vm12, nan, %v833_v9  ;;  %v1454_v10 = vsel %vm824_vm12, nan, %v1453_v1 }
 0x435   :  { %v1874_v11 = vmul.f32 0.25, %v834_v52  ;;  %v1876_v12 = vmul.f32 0.25, %v1454_v10  ;;  %vm1052_vm6 = vcmp.gt.s32.totalorder %v1051_v46, 0 }
 0x436   :  { %v2472_v17 = vpop.eup %2471  ;;  %v1053_v48 = vsel %vm1052_vm6, %v1051_v46, 0  ;;  %vm1145_vm6 = vcmp.le.f32.partialorder %v1144_v56, 0.7853982 }
 0x437   :  { %2403 = vmatprep.subr.mxu0 %v1874_v11  ;;  %2410 = vmatprep.subr.mxu1 %v1876_v12  ;;  %v2474_v18 = vpop.eup %2473  ;;  %v728_v20 = vxor.u32 2147483648, %v2472_v17  ;;  %v1055_v50 = vand.u32 31, %v1053_v48 }
 0x438   :  { %2404 = vmatpush3.msra.mxu0 %v1874_v11  ;;  %2411 = vmatpush3.msra.mxu1 %v1876_v12  ;;  %v725_v22 = vxor.u32 2147483648, %v2474_v18  ;;  %v2812_v11 = vshrl.u32 %v1053_v48, 5 }
 0x439   :  { %v729_v54 = vsel %vm727_vm13, %v728_v20, %v2474_v18  ;;  %v1348_v24 = vsel %vm1346_vm14, %v728_v20, %v2474_v18  ;;  %v2787_v53 = vsub.s32 32, %v1055_v50  ;;  %v1067_v1 = vshll.u32 %v2519_v23, %v1055_v50 }
 0x43a   :  { %v726_v26 = vsel %vm724_vm15, %v2472_v17, %v725_v22  ;;  %v1345_v27 = vsel %vm1343_vm0, %v2472_v17, %v725_v22  ;;  %v1070_v12 = vshll.u32 %v2520_v25, %v1055_v50  ;;  %v1058_v17 = vshll.u32 %v2516_v16, %v1055_v50 }
 0x43b   :  { %v730_v28 = vsel %vm723_vm2, %v726_v26, %v729_v54  ;;  %v1349_v29 = vsel %vm1342_vm3, %v1345_v27, %v1348_v24  ;;  %v1068_v52 = vshrl.u32 %v2520_v25, %v2787_v53  ;;  %v1071_v13 = vshrl.u32 %v2521_v32, %v2787_v53 }
 0x43c   :  { %v731_v30 = vsel %vm721_vm4, nan, %v730_v28  ;;  %v1350_v61 = vsel %vm721_vm4, nan, %v1349_v29  ;;  %v1061_v18 = vshll.u32 %v2517_v19, %v1055_v50  ;;  %v1059_v20 = vshrl.u32 %v2517_v19, %v2787_v53 }
 0x43d   :  { %v1873_v62 = vmul.f32 0.25, %v731_v30  ;;  %v1875_v31 = vmul.f32 0.25, %v1350_v61  ;;  %v1062_v22 = vshrl.u32 %v2518_v21, %v2787_v53  ;;  %v1064_v54 = vshll.u32 %v2518_v21, %v1055_v50 }
 0x43e   :  { %v1065_v24 = vshrl.u32 %v2519_v23, %v2787_v53  ;;  %v1048_v27 = vand.u32 8388607, %v1041_v2  ;;  %v1069_v28 = vor.u32 %v1068_v52, %v1067_v1  ;;  %v1072_v61 = vor.u32 %v1071_v13, %v1070_v12 }
 0x43f   :  { %2405 = vmatprep.subr.mxu0 %v1873_v62  ;;  %2412 = vmatprep.subr.mxu1 %v1875_v31  ;;  %vm1076_vm8 = vcmp.lt.s32.totalorder %v2812_v11, 4  ;;  %v1060_v33 = vor.u32 %v1059_v20, %v1058_v17  ;;  %v1063_v35 = vor.u32 %v1062_v22, %v1061_v18  ;;  %vm1073_vm12 = vcmp.lt.s32.totalorder %v2812_v11, 1 }
 0x440   :  { %2406 = vmatpush3.msra.mxu0 %v1873_v62  ;;  %2413 = vmatpush3.msra.mxu1 %v1875_v31  ;;  %v1152_v62 = vor.u32 8388608, %v1151_v55  ;;  %v1066_v36 = vor.u32 %v1065_v24, %v1064_v54  ;;  %vm1075_vm13 = vcmp.lt.s32.totalorder %v2812_v11, 3  ;;  %v1082_v38 = vsel %vm1076_vm8, %v1069_v28, 920167782 }
 0x441   :  { %2408 = vmatmul.mubr.msk.f32.vlgmr.msra.gmra.mxu0 %vm152_vm1, %v2768_v14  ;;  %2415 = vmatmul.mubr.msk.f32.vlgmr.msra.gmra.mxu1 %vm152_vm1, %v2768_v14  ;;  %v1049_v41 = vor.u32 8388608, %v1048_v27  ;;  %v1086_v42 = vsel %vm1076_vm8, %v1072_v61, 1326507024  ;;  %vm1074_vm14 = vcmp.lt.s32.totalorder %v2812_v11, 2  ;;  %vm1146_vm4 = vcmp.lt.s32.totalorder %v2778_v34, 0 }
 0x442   :  { %2421 = vmatprep.mubr.msk.f32.mxu0 %vm152_vm1, %v2676_v49  ;;  %2428 = vmatprep.mubr.msk.f32.mxu1 %vm152_vm1, %v2676_v49  ;;  %v1156_v49 = vsel %vm1155_vm5, %v1154_v45, 0  ;;  %v1192_v46 = vshll.u32 %v1152_v62, 8  ;;  %v1085_v50 = vsel %vm1073_vm12, %v1063_v35, %v1066_v36  ;;  %v1087_v55 = vsel %vm1075_vm13, %v1069_v28, %v1086_v42 }
 0x443   :  { %v1158_v47 = vand.u32 31, %v1156_v49  ;;  %v2794_v59 = vshrl.u32 %v1156_v49, 5  ;;  %v1081_v49 = vsel %vm1073_vm12, %v1060_v33, %v1063_v35  ;;  %vm1043_vm5 = vcmp.lt.s32.totalorder %v2780_v37, 0 }
 0x445   :  { %v2785_v51 = vsub.s32 32, %v1158_v47  ;;  %v1170_v43 = vshll.u32 %v2519_v23, %v1158_v47  ;;  %v1173_v60 = vshll.u32 %v2520_v25, %v1158_v47  ;;  %v1161_v5 = vshll.u32 %v2516_v16, %v1158_v47 }
 0x446   :  { %v1164_v6 = vshll.u32 %v2517_v19, %v1158_v47  ;;  %v1167_v8 = vshll.u32 %v2518_v21, %v1158_v47  ;;  %vm1179_vm7 = vcmp.lt.s32.totalorder %v2794_v59, 4  ;;  %vm1176_vm9 = vcmp.lt.s32.totalorder %v2794_v59, 1 }
 0x447   :  { %v1171_v57 = vshrl.u32 %v2520_v25, %v2785_v51  ;;  %v1174_v63 = vshrl.u32 %v2521_v32, %v2785_v51  ;;  %v1162_v3 = vshrl.u32 %v2517_v19, %v2785_v51  ;;  %v1165_v7 = vshrl.u32 %v2518_v21, %v2785_v51 }
 0x448   :  { %v1168_v9 = vshrl.u32 %v2519_v23, %v2785_v51  ;;  %vm1178_vm10 = vcmp.lt.s32.totalorder %v2794_v59, 3  ;;  %vm1177_vm11 = vcmp.lt.s32.totalorder %v2794_v59, 2  ;;  %v1083_v47 = vsel %vm1075_vm13, %v1066_v36, %v1082_v38 }
 0x449   :  { %v1172_v10 = vor.u32 %v1171_v57, %v1170_v43  ;;  %v1175_v15 = vor.u32 %v1174_v63, %v1173_v60  ;;  %v1163_v26 = vor.u32 %v1162_v3, %v1161_v5  ;;  %v1166_v29 = vor.u32 %v1165_v7, %v1164_v6 }
 0x44a   :  { %v1169_v30 = vor.u32 %v1168_v9, %v1167_v8  ;;  %v1089_v57 = vshll.u32 %v1049_v41, 8  ;;  %v1084_v60 = vsel %vm1074_vm14, %v1081_v49, %v1083_v47  ;;  %v1088_v3 = vsel %vm1074_vm14, %v1085_v50, %v1087_v55 }
 0x44b   :  { %v1185_v31 = vsel %vm1179_vm7, %v1172_v10, 920167782  ;;  %v1189_v58 = vsel %vm1179_vm7, %v1175_v15, 1326507024  ;;  %v1184_v39 = vsel %vm1176_vm9, %v1163_v26, %v1166_v29  ;;  %v1160_v6 = vshrl.u32 %v2516_v16, %v2785_v51 }
 0x44c   :  { %v1186_v40 = vsel %vm1178_vm10, %v1169_v30, %v1185_v31  ;;  %v1188_v44 = vsel %vm1176_vm9, %v1166_v29, %v1169_v30  ;;  %v1190_v45 = vsel %vm1178_vm10, %v1172_v10, %v1189_v58  ;;  %v1181_v9 = vsel %vm1179_vm7, %v1169_v30, 2102212464 }
 0x44d   :  { %v1187_v48 = vsel %vm1177_vm11, %v1184_v39, %v1186_v40  ;;  %v1191_v43 = vsel %vm1177_vm11, %v1188_v44, %v1190_v45  ;;  %v2878_v1 = vmul.u32.u64.low %v1089_v57, %v1084_v60  ;;  %v2879_v52 = vmul.u32.u64.high %v1089_v57, %v1084_v60, %v2878_v1 }
 0x44e   :  { %v2866_v63 = vmul.u32.u64.low %v1192_v46, %v1187_v48  ;;  %v2867_v5 = vmul.u32.u64.high %v1192_v46, %v1187_v48, %v2866_v63  ;;  %v2873_v7 = vmul.u32.u64.low %v1192_v46, %v1191_v43  ;;  %v2874_v8 = vmul.u32.u64.high %v1192_v46, %v1191_v43, %v2873_v7 }
 0x44f   :  { %v1057_v10 = vshrl.u32 %v2516_v16, %v2787_v53  ;;  %v2883_v12 = vmul.u32.u64.low %v1089_v57, %v1088_v3  ;;  %v2884_v13 = vmul.u32.u64.high %v1089_v57, %v1088_v3, %v2883_v12  ;;  %v1078_v15 = vsel %vm1076_vm8, %v1066_v36, 2102212464 }
 0x450   :  { %v1180_v51 = vsel %vm1176_vm9, %v1160_v6, %v1163_v26  ;;  %v1182_v17 = vsel %vm1178_vm10, %v1166_v29, %v1181_v9  ;;  %v1079_v20 = vsel %vm1075_vm13, %v1063_v35, %v1078_v15  ;;  %v1202_v22 = vadd.s32 1, %v2867_v5 }
 0x451   :  { %v1077_v18 = vsel %vm1073_vm12, %v1057_v10, %v1060_v33  ;;  %v1183_v53 = vsel %vm1177_vm11, %v1180_v51, %v1182_v17  ;;  %vm1201_vm15 = vc.u32 %v2874_v8, %v2866_v63  ;;  %v1099_v24 = vadd.s32 1, %v2879_v52 }
 0x452   :  { %v1080_v54 = vsel %vm1074_vm14, %v1077_v18, %v1079_v20  ;;  %v1199_v26 = vmul.u32 %v1192_v46, %v1183_v53  ;;  %vm1098_vm0 = vc.u32 %v2884_v13, %v2878_v1  ;;  %v1203_v27 = vsel %vm1201_vm15, %v1202_v22, %v2867_v5 }
 0x453   :  { %v1096_v28 = vmul.u32 %v1089_v57, %v1080_v54  ;;  %v1100_v29 = vsel %vm1098_vm0, %v1099_v24, %v2879_v52  ;;  %v1200_v55 = vadd.s32 %v2866_v63, %v2874_v8  ;;  %v1097_v60 = vadd.s32 %v2878_v1, %v2884_v13 }
 0x454   :  { %v1204_v30 = vadd.s32 %v1203_v27, %v1199_v26  ;;  %vm1042_vm7 = vcmp.le.f32.partialorder %v1041_v2, 0.7853982 }
 0x455   :  { %v1101_v59 = vadd.s32 %v1100_v29, %v1096_v28 }
 0x456   :  { %v1205_v61 = vadd.s32 536870912, %v1204_v30 }
 0x457   :  { %v1102_v62 = vadd.s32 536870912, %v1101_v59 }
 0x458   :  { %v1206_v31 = vshrl.u32 %v1205_v61, 30 }
 0x459   :  { %v1103_v58 = vshrl.u32 %v1102_v62, 30 }
 0x45a   :  { %v1207_v33 = vshll.u32 %v1206_v31, 30  ;;  %v1230_v29 = vsub.s32 4, %v1206_v31 }
 0x45b   :  { %v1104_v35 = vshll.u32 %v1103_v58, 30 }
 0x45c   :  { %v1208_v11 = vsub.s32 %v1204_v30, %v1207_v33  ;;  %v1127_v30 = vsub.s32 4, %v1103_v58 }
 0x45d   :  { %v1105_v36 = vsub.s32 %v1101_v59, %v1104_v35  ;;  %v1231_v59 = vsel %vm1146_vm4, %v1230_v29, %v1206_v31 }
 0x45e   :  { %v1210_v38 = vsub.s32 0, %v1208_v11  ;;  %v1128_v61 = vsel %vm1043_vm5, %v1127_v30, %v1103_v58  ;;  %v1233_v62 = vsel %vm1145_vm6, 0, %v1231_v59 }
 0x45f   :  { %v1107_v39 = vsub.s32 0, %v1105_v36  ;;  %v1130_v33 = vsel %vm1042_vm7, 0, %v1128_v61  ;;  %v1860_v35 = vadd.s32 3, %v1233_v62 }
 0x460   :  { %v2280_v40 = vmin.u32 %v1210_v38, %v1208_v11  ;;  %v1756_v56 = vadd.s32 3, %v1130_v33  ;;  %v1237_v38 = vand.u32 3, %v1233_v62 }
 0x461   :  { %v2276_v41 = vmin.u32 %v1107_v39, %v1105_v36  ;;  %v1861_v2 = vand.u32 3, %v1860_v35 }
 0x462   :  { %v1212_v42 = vclz %v2280_v40  ;;  %vm1239_vm8 = vcmp.eq.s32.totalorder %v1237_v38, 0  ;;  %vm1242_vm9 = vcmp.eq.s32.totalorder %v1237_v38, 2  ;;  %vm1238_vm12 = vcmp.lt.s32.totalorder %v1237_v38, 2 }
 0x463   :  { %v1109_v44 = vclz %v2276_v41  ;;  %v1134_v41 = vand.u32 3, %v1130_v33  ;;  %vm1863_vm10 = vcmp.eq.s32.totalorder %v1861_v2, 0  ;;  %vm1866_vm11 = vcmp.eq.s32.totalorder %v1861_v2, 2 }
 0x464   :  { %v2281_v45 = vadd.s32 4294967294, %v1212_v42  ;;  %v1757_v42 = vand.u32 3, %v1756_v56  ;;  %vm1862_vm13 = vcmp.lt.s32.totalorder %v1861_v2, 2 }
 0x465   :  { %v2277_v46 = vadd.s32 4294967294, %v1109_v44  ;;  %vm1136_vm14 = vcmp.eq.s32.totalorder %v1134_v41, 0  ;;  %vm1139_vm15 = vcmp.eq.s32.totalorder %v1134_v41, 2 }
 0x466   :  { %vm2282_vm2 = vcmp.lt.s32.totalorder %v2281_v45, 0  ;;  %vm1759_vm0 = vcmp.eq.s32.totalorder %v1757_v42, 0 }
 0x467   :  { %vm2278_vm3 = vcmp.lt.s32.totalorder %v2277_v46, 0  ;;  %v1215_v49 = vsel %vm2282_vm2, 0, %v2281_v45  ;;  %vm1762_vm2 = vcmp.eq.s32.totalorder %v1757_v42, 2 }
 0x468   :  { %v1112_v47 = vsel %vm2278_vm3, 0, %v2277_v46  ;;  %v1220_v48 = vsub.s32 4294967266, %v1215_v49  ;;  %v1216_v43 = vsub.s32 32, %v1215_v49  ;;  %v1217_v6 = vshll.u32 %v1208_v11, %v1215_v49 }
 0x469   :  { %v1117_v50 = vsub.s32 4294967266, %v1112_v47  ;;  %v1113_v5 = vsub.s32 32, %v1112_v47  ;;  %v1114_v52 = vshll.u32 %v1105_v36, %v1112_v47  ;;  %vm1135_vm3 = vcmp.lt.s32.totalorder %v1134_v41, 2 }
 0x46a   :  { %v1221_v57 = vadd.s32 127, %v1220_v48  ;;  %v1218_v7 = vshrl.u32 %v1200_v55, %v1216_v43 }
 0x46b   :  { %v1118_v3 = vadd.s32 127, %v1117_v50  ;;  %v1115_v10 = vshrl.u32 %v1097_v60, %v1113_v5 }
 0x46c   :  { %v1222_v9 = vshll.u32 %v1221_v57, 23  ;;  %v1219_v15 = vor.u32 %v1218_v7, %v1217_v6 }
 0x46d   :  { %v1119_v12 = vshll.u32 %v1118_v3, 23  ;;  %v1116_v17 = vor.u32 %v1115_v10, %v1114_v52 }
 0x46e   :  { %v1223_v51 = vor.u32 4788187, %v1222_v9  ;;  %v1226_v53 = vcvt.s32.f32 %v1219_v15 }
 0x46f   :  { %v1120_v18 = vor.u32 4788187, %v1119_v12  ;;  %v1123_v63 = vcvt.s32.f32 %v1116_v17 }
 0x470   :  { %v1224_v20 = vand.u32 2147483647, %v1223_v51 }
 0x471   :  { %v1121_v22 = vand.u32 2147483647, %v1120_v18 }
 0x472   :  { %v1227_v8 = vmul.f32 %v1226_v53, %v1224_v20 }
 0x473   :  { %v1124_v54 = vmul.f32 %v1123_v63, %v1121_v22 }
 0x474   :  { %v1228_v24 = vxor.u32 2147483648, %v1227_v8 }
 0x475   :  { %v1125_v1 = vxor.u32 2147483648, %v1124_v54 }
 0x476   :  { %v1229_v13 = vsel %vm1146_vm4, %v1228_v24, %v1227_v8  ;;  %vm1758_vm4 = vcmp.lt.s32.totalorder %v1757_v42, 2 }
 0x477   :  { %v1126_v26 = vsel %vm1043_vm5, %v1125_v1, %v1124_v54  ;;  %v1232_v27 = vsel %vm1145_vm6, %v2778_v34, %v1229_v13  ;;  %vm1236_vm5 = vweird.f32 %v2778_v34  ;;  %vm1133_vm6 = vweird.f32 %v2780_v37 }
 0x478   :  { %v1129_v28 = vsel %vm1042_vm7, %v2780_v37, %v1126_v26  ;;  %2475 = vcosq.f32 %v1232_v27  ;;  %v941_v26 = vand.u32 2139095040, %v2691_v0 }
 0x479   :  { %2477 = vsinq.f32 %v1232_v27  ;;  %v838_v27 = vand.u32 2139095040, %v2694_v4 }
 0x47a   :  { %2479 = vcosq.f32 %v1129_v28 }
 0x47b   :  { %2481 = vsinq.f32 %v1129_v28  ;;  %v942_v28 = vshrl.u32 %v941_v26, 23  ;;  %v839_v29 = vshrl.u32 %v838_v27, 23 }
 0x47d   :  { %v2271_v30 = vadd.s32 4294967169, %v942_v28  ;;  %v2267_v59 = vadd.s32 4294967169, %v839_v29 }
 0x47f   :  { %v948_v61 = vadd.s32 1, %v2271_v30  ;;  %v845_v62 = vadd.s32 1, %v2267_v59 }
 0x481   :  { %vm949_vm7 = vcmp.gt.s32.totalorder %v948_v61, 0 }
 0x482   :  { %v950_v33 = vsel %vm949_vm7, %v948_v61, 0 }
 0x483   :  { %v952_v35 = vand.u32 31, %v950_v33  ;;  %v2937_v42 = vshrl.u32 %v950_v33, 5 }
 0x485   :  { %v2476_v11 = vpop.eup %2475  ;;  %v964_v2 = vshll.u32 %v2519_v23, %v952_v35 }
 0x486   :  { %v2478_v36 = vpop.eup %2477  ;;  %v1243_v45 = vxor.u32 2147483648, %v2476_v11 }
 0x487   :  { %v2480_v39 = vpop.eup %2479  ;;  %v1240_v44 = vxor.u32 2147483648, %v2478_v36 }
 0x488   :  { %v2482_v40 = vpop.eup %2481  ;;  %v1140_v58 = vxor.u32 2147483648, %v2480_v39  ;;  %v1244_v49 = vsel %vm1242_vm9, %v1243_v45, %v2478_v36  ;;  %v1868_v48 = vsel %vm1866_vm11, %v1243_v45, %v2478_v36  ;;  %v2926_v36 = vsub.s32 32, %v952_v35 }
 0x489   :  { %v1137_v31 = vxor.u32 2147483648, %v2482_v40  ;;  %v1241_v46 = vsel %vm1239_vm8, %v2476_v11, %v1240_v44  ;;  %v1865_v47 = vsel %vm1863_vm10, %v2476_v11, %v1240_v44  ;;  %vm846_vm8 = vcmp.gt.s32.totalorder %v845_v62, 0 }
 0x48a   :  { %v1141_v55 = vsel %vm1139_vm15, %v1140_v58, %v2482_v40  ;;  %v1764_v57 = vsel %vm1762_vm2, %v1140_v58, %v2482_v40  ;;  %v1245_v60 = vsel %vm1238_vm12, %v1241_v46, %v1244_v49  ;;  %v1869_v5 = vsel %vm1862_vm13, %v1865_v47, %v1868_v48 }
 0x48b   :  { %v1138_v50 = vsel %vm1136_vm14, %v2480_v39, %v1137_v31  ;;  %v1761_v43 = vsel %vm1759_vm0, %v2480_v39, %v1137_v31  ;;  %v1246_v7 = vsel %vm1236_vm5, nan, %v1245_v60  ;;  %v1870_v9 = vsel %vm1236_vm5, nan, %v1869_v5 }
 0x48c   :  { %v1142_v3 = vsel %vm1135_vm3, %v1138_v50, %v1141_v55  ;;  %v1765_v6 = vsel %vm1758_vm4, %v1761_v43, %v1764_v57  ;;  %v847_v56 = vsel %vm846_vm8, %v845_v62, 0  ;;  %v965_v39 = vshrl.u32 %v2520_v25, %v2926_v36 }
 0x48d   :  { %v1143_v18 = vsel %vm1133_vm6, nan, %v1142_v3  ;;  %v1766_v20 = vsel %vm1133_vm6, nan, %v1765_v6  ;;  %v849_v11 = vand.u32 31, %v847_v56  ;;  %v835_v40 = vand.u32 2147483647, %v2694_v4 }
 0x48e   :  { %v967_v44 = vshll.u32 %v2520_v25, %v952_v35  ;;  %v968_v45 = vshrl.u32 %v2521_v32, %v2926_v36  ;;  %v955_v31 = vshll.u32 %v2516_v16, %v952_v35  ;;  %v956_v58 = vshrl.u32 %v2517_v19, %v2926_v36 }
 0x48f   :  { %v2929_v38 = vsub.s32 32, %v849_v11  ;;  %v958_v46 = vshll.u32 %v2517_v19, %v952_v35  ;;  %v959_v49 = vshrl.u32 %v2518_v21, %v2926_v36  ;;  %v961_v47 = vshll.u32 %v2518_v21, %v952_v35 }
 0x490   :  { %v962_v48 = vshrl.u32 %v2519_v23, %v2926_v36  ;;  %v861_v50 = vshll.u32 %v2519_v23, %v849_v11  ;;  %v966_v43 = vor.u32 %v965_v39, %v964_v2  ;;  %v2954_v57 = vshrl.u32 %v847_v56, 5 }
 0x491   :  { %v862_v55 = vshrl.u32 %v2520_v25, %v2929_v38  ;;  %v864_v60 = vshll.u32 %v2520_v25, %v849_v11  ;;  %v865_v5 = vshrl.u32 %v2521_v32, %v2929_v38  ;;  %v969_v3 = vor.u32 %v968_v45, %v967_v44 }
 0x492   :  { %v852_v6 = vshll.u32 %v2516_v16, %v849_v11  ;;  %v859_v25 = vshrl.u32 %v2519_v23, %v2929_v38  ;;  %v842_v32 = vand.u32 8388607, %v835_v40  ;;  %vm870_vm9 = vcmp.lt.s32.totalorder %v2954_v57, 4 }
 0x493   :  { %vm970_vm10 = vcmp.lt.s32.totalorder %v2937_v42, 1  ;;  %vm972_vm11 = vcmp.lt.s32.totalorder %v2937_v42, 3  ;;  %vm867_vm12 = vcmp.lt.s32.totalorder %v2954_v57, 1  ;;  %vm869_vm13 = vcmp.lt.s32.totalorder %v2954_v57, 3 }
 0x494   :  { %vm971_vm14 = vcmp.lt.s32.totalorder %v2937_v42, 2  ;;  %vm868_vm15 = vcmp.lt.s32.totalorder %v2954_v57, 2  ;;  %vm940_vm5 = vcmp.lt.s32.totalorder %v2691_v0, 0  ;;  %vm837_vm6 = vcmp.lt.s32.totalorder %v2694_v4, 0 }
 0x495   :  { %vm836_vm8 = vcmp.le.f32.partialorder %v835_v40, 0.7853982 }
 0x501   :  { %v2409_v52 = vpop.f32.mrf.mxu0  ;;  %v2416_v10 = vpop.f32.mrf.mxu1 }
 0x502   :  { %v2034_v12 = vmul.f32 %v2409_v52, %v1246_v7  ;;  %v2040_v15 = vmul.f32 %v2409_v52, %v1870_v9  ;;  %v2036_v51 = vmul.f32 %v2416_v10, %v1870_v9  ;;  %v2042_v17 = vmul.f32 %v2416_v10, %v1246_v7 }
 0x503   :  { %v1949_v53 = vpop.f32.mrf.mxu0  ;;  %v2024_v34 = vpop.f32.mrf.mxu1  ;;  %v855_v7 = vshll.u32 %v2517_v19, %v849_v11  ;;  %v853_v9 = vshrl.u32 %v2517_v19, %v2929_v38  ;;  %v856_v52 = vshrl.u32 %v2518_v21, %v2929_v38  ;;  %v858_v10 = vshll.u32 %v2518_v21, %v849_v11 }
 0x504   :  { %v2038_v22 = vsub.f32 %v2034_v12, %v2036_v51  ;;  %v2044_v63 = vadd.f32 %v2042_v17, %v2040_v15  ;;  %v2033_v8 = vmul.f32 %v1949_v53, %v1143_v18  ;;  %v2039_v54 = vmul.f32 %v1949_v53, %v1766_v20 }
 0x505   :  { %v2035_v24 = vmul.f32 %v2024_v34, %v1766_v20  ;;  %v2041_v37 = vmul.f32 %v2024_v34, %v1143_v18  ;;  %v957_v12 = vor.u32 %v956_v58, %v955_v31  ;;  %v863_v15 = vor.u32 %v862_v55, %v861_v50 }
 0x506   :  { %2417 = vmatprep.subr.mxu0 %v2038_v22  ;;  %2424 = vmatprep.subr.mxu1 %v2044_v63  ;;  %v960_v51 = vor.u32 %v959_v49, %v958_v46  ;;  %v963_v17 = vor.u32 %v962_v48, %v961_v47  ;;  %v866_v18 = vor.u32 %v865_v5, %v864_v60 }
 0x507   :  { %v2037_v1 = vsub.f32 %v2033_v8, %v2035_v24  ;;  %v2043_v13 = vadd.f32 %v2041_v37, %v2039_v54  ;;  %2418 = vmatpush3.msra.mxu0 %v2038_v22  ;;  %2425 = vmatpush3.msra.mxu1 %v2044_v63  ;;  %v854_v23 = vor.u32 %v853_v9, %v852_v6  ;;  %v843_v22 = vor.u32 8388608, %v842_v32 }
 0x508   :  { %v857_v53 = vor.u32 %v856_v52, %v855_v7  ;;  %v860_v34 = vor.u32 %v859_v25, %v858_v10  ;;  %v876_v63 = vsel %vm870_vm9, %v863_v15, 920167782  ;;  %v978_v8 = vsel %vm970_vm10, %v957_v12, %v960_v51 }
 0x509   :  { %2419 = vmatprep.subr.mxu0 %v2037_v1  ;;  %2426 = vmatprep.subr.mxu1 %v2043_v13  ;;  %v880_v24 = vsel %vm870_vm9, %v866_v18, 1326507024  ;;  %v982_v37 = vsel %vm970_vm10, %v960_v51, %v963_v17  ;;  %v883_v61 = vshll.u32 %v843_v22, 8  ;;  %v954_v11 = vshrl.u32 %v2516_v16, %v2926_v36 }
 0x50a   :  { %2420 = vmatpush3.msra.mxu0 %v2037_v1  ;;  %2427 = vmatpush3.msra.mxu1 %v2043_v13  ;;  %v875_v26 = vsel %vm867_vm12, %v854_v23, %v857_v53  ;;  %v877_v27 = vsel %vm869_vm13, %v860_v34, %v876_v63  ;;  %v879_v29 = vsel %vm867_vm12, %v857_v53, %v860_v34  ;;  %v872_v49 = vsel %vm870_vm9, %v860_v34, 2102212464 }
 0x50b   :  { %2422 = vmatmul.mubr.msk.f32.vlgmr.msra.gmra.mxu0 %vm152_vm1, %v2768_v14  ;;  %2429 = vmatmul.mubr.msk.f32.vlgmr.msra.gmra.mxu1 %vm152_vm1, %v2768_v14  ;;  %v938_v14 = vand.u32 2147483647, %v2691_v0  ;;  %vm973_vm1 = vcmp.lt.s32.totalorder %v2937_v42, 4  ;;  %v881_v30 = vsel %vm869_vm13, %v863_v15, %v880_v24  ;;  %v878_v62 = vsel %vm868_vm15, %v875_v26, %v877_v27 }
 0x50c   :  { %v979_v19 = vsel %vm973_vm1, %v966_v43, 920167782  ;;  %v983_v21 = vsel %vm973_vm1, %v969_v3, 1326507024  ;;  %v882_v56 = vsel %vm868_vm15, %v879_v29, %v881_v30  ;;  %v851_v31 = vshrl.u32 %v2516_v16, %v2929_v38 }
 0x50d   :  { %v945_v41 = vand.u32 8388607, %v938_v14  ;;  %v980_v54 = vsel %vm972_vm11, %v963_v17, %v979_v19  ;;  %v984_v1 = vsel %vm972_vm11, %v966_v43, %v983_v21  ;;  %v974_v36 = vsel %vm970_vm10, %v954_v11, %v957_v12 }
 0x50e   :  { %v981_v28 = vsel %vm971_vm14, %v978_v8, %v980_v54  ;;  %v985_v59 = vsel %vm971_vm14, %v982_v37, %v984_v1  ;;  %v3020_v44 = vmul.u32.u64.low %v883_v61, %v878_v62  ;;  %v3021_v45 = vmul.u32.u64.high %v883_v61, %v878_v62, %v3020_v44 }
 0x50f   :  { %v946_v20 = vor.u32 8388608, %v945_v41  ;;  %v975_v41 = vsel %vm973_vm1, %v963_v17, 2102212464  ;;  %v3025_v58 = vmul.u32.u64.low %v883_v61, %v882_v56  ;;  %v3026_v46 = vmul.u32.u64.high %v883_v61, %v882_v56, %v3025_v58 }
 0x510   :  { %v976_v47 = vsel %vm972_vm11, %v960_v51, %v975_v41  ;;  %v871_v48 = vsel %vm867_vm12, %v851_v31, %v854_v23  ;;  %v873_v50 = vsel %vm869_vm13, %v857_v53, %v872_v49  ;;  %v893_v43 = vadd.s32 1, %v3021_v45 }
 0x511   :  { %v986_v13 = vshll.u32 %v946_v20, 8  ;;  %v977_v16 = vsel %vm971_vm14, %v974_v36, %v976_v47  ;;  %v874_v55 = vsel %vm868_vm15, %v871_v48, %v873_v50  ;;  %vm892_vm2 = vc.u32 %v3026_v46, %v3020_v44 }
 0x512   :  { %v890_v3 = vmul.u32 %v883_v61, %v874_v55  ;;  %v894_v6 = vsel %vm892_vm2, %v893_v43, %v3021_v45  ;;  %v891_v1 = vadd.s32 %v3020_v44, %v3026_v46  ;;  %vm939_vm7 = vcmp.le.f32.partialorder %v938_v14, 0.7853982 }
 0x513   :  { %v3008_v33 = vmul.u32.u64.low %v986_v13, %v981_v28  ;;  %v3009_v35 = vmul.u32.u64.high %v986_v13, %v981_v28, %v3008_v33  ;;  %v3015_v2 = vmul.u32.u64.low %v986_v13, %v985_v59  ;;  %v3016_v39 = vmul.u32.u64.high %v986_v13, %v985_v59, %v3015_v2 }
 0x514   :  { %v993_v60 = vmul.u32 %v986_v13, %v977_v16  ;;  %v895_v42 = vadd.s32 %v894_v6, %v890_v3 }
 0x515   :  { %v996_v38 = vadd.s32 1, %v3009_v35  ;;  %vm995_vm0 = vc.u32 %v3016_v39, %v3008_v33  ;;  %v994_v54 = vadd.s32 %v3008_v33, %v3016_v39 }
 0x516   :  { %v896_v52 = vadd.s32 536870912, %v895_v42 }
 0x517   :  { %v997_v5 = vsel %vm995_vm0, %v996_v38, %v3009_v35 }
 0x518   :  { %v998_v7 = vadd.s32 %v997_v5, %v993_v60  ;;  %v897_v25 = vshrl.u32 %v896_v52, 30 }
 0x51a   :  { %v999_v9 = vadd.s32 536870912, %v998_v7  ;;  %v898_v32 = vshll.u32 %v897_v25, 30  ;;  %v921_v50 = vsub.s32 4, %v897_v25 }
 0x51c   :  { %v1000_v10 = vshrl.u32 %v999_v9, 30  ;;  %v899_v15 = vsub.s32 %v895_v42, %v898_v32  ;;  %v922_v38 = vsel %vm837_vm6, %v921_v50, %v897_v25 }
 0x51d   :  { %v924_v43 = vsel %vm836_vm8, 0, %v922_v38 }
 0x51e   :  { %v1001_v12 = vshll.u32 %v1000_v10, 30  ;;  %v901_v17 = vsub.s32 0, %v899_v15  ;;  %v1024_v48 = vsub.s32 4, %v1000_v10  ;;  %v1548_v14 = vadd.s32 3, %v924_v43 }
 0x51f   :  { %v928_v9 = vand.u32 3, %v924_v43 }
 0x520   :  { %v1002_v57 = vsub.s32 %v998_v7, %v1001_v12  ;;  %v2268_v20 = vmin.u32 %v901_v17, %v899_v15  ;;  %v1025_v16 = vsel %vm940_vm5, %v1024_v48, %v1000_v10  ;;  %v1549_v52 = vand.u32 3, %v1548_v14 }
 0x521   :  { %v1027_v55 = vsel %vm939_vm7, 0, %v1025_v16  ;;  %vm930_vm12 = vcmp.eq.s32.totalorder %v928_v9, 0  ;;  %vm933_vm13 = vcmp.eq.s32.totalorder %v928_v9, 2 }
 0x522   :  { %v1004_v51 = vsub.s32 0, %v1002_v57  ;;  %v903_v21 = vclz %v2268_v20  ;;  %v1652_v60 = vadd.s32 3, %v1027_v55  ;;  %v1031_v6 = vand.u32 3, %v1027_v55 }
 0x523   :  { %vm1551_vm14 = vcmp.eq.s32.totalorder %v1549_v52, 0  ;;  %vm1554_vm15 = vcmp.eq.s32.totalorder %v1549_v52, 2 }
 0x524   :  { %v2272_v18 = vmin.u32 %v1004_v51, %v1002_v57  ;;  %v2269_v53 = vadd.s32 4294967294, %v903_v21  ;;  %v1653_v7 = vand.u32 3, %v1652_v60  ;;  %vm1033_vm1 = vcmp.eq.s32.totalorder %v1031_v6, 0 }
 0x525   :  { %vm1036_vm9 = vcmp.eq.s32.totalorder %v1031_v6, 2  ;;  %vm1032_vm0 = vcmp.lt.s32.totalorder %v1031_v6, 2 }
 0x526   :  { %v1006_v19 = vclz %v2272_v18  ;;  %vm2270_vm4 = vcmp.lt.s32.totalorder %v2269_v53, 0  ;;  %vm1655_vm10 = vcmp.eq.s32.totalorder %v1653_v7, 0  ;;  %vm1658_vm11 = vcmp.eq.s32.totalorder %v1653_v7, 2 }
 0x527   :  { %v906_v22 = vsel %vm2270_vm4, 0, %v2269_v53  ;;  %vm1654_vm2 = vcmp.lt.s32.totalorder %v1653_v7, 2  ;;  %vm1550_vm4 = vcmp.lt.s32.totalorder %v1549_v52, 2 }
 0x528   :  { %v2273_v23 = vadd.s32 4294967294, %v1006_v19  ;;  %v911_v8 = vsub.s32 4294967266, %v906_v22  ;;  %v907_v13 = vsub.s32 32, %v906_v22  ;;  %v908_v30 = vshll.u32 %v899_v15, %v906_v22 }
 0x52a   :  { %vm2274_vm3 = vcmp.lt.s32.totalorder %v2273_v23, 0  ;;  %v912_v26 = vadd.s32 127, %v911_v8  ;;  %v909_v59 = vshrl.u32 %v891_v1, %v907_v13 }
 0x52b   :  { %v1009_v34 = vsel %vm2274_vm3, 0, %v2273_v23  ;;  %vm929_vm3 = vcmp.lt.s32.totalorder %v928_v9, 2 }
 0x52c   :  { %v1014_v63 = vsub.s32 4294967266, %v1009_v34  ;;  %v1010_v24 = vsub.s32 32, %v1009_v34  ;;  %v1011_v27 = vshll.u32 %v1002_v57, %v1009_v34  ;;  %v913_v61 = vshll.u32 %v912_v26, 23 }
 0x52d   :  { %v910_v56 = vor.u32 %v909_v59, %v908_v30 }
 0x52e   :  { %v1015_v37 = vadd.s32 127, %v1014_v63  ;;  %v1012_v28 = vshrl.u32 %v994_v54, %v1010_v24  ;;  %v914_v11 = vor.u32 4788187, %v913_v61 }
 0x52f   :  { %v917_v33 = vcvt.s32.f32 %v910_v56 }
 0x530   :  { %v1016_v29 = vshll.u32 %v1015_v37, 23  ;;  %v1013_v62 = vor.u32 %v1012_v28, %v1011_v27  ;;  %v915_v45 = vand.u32 2147483647, %v914_v11 }
 0x532   :  { %v1017_v35 = vor.u32 4788187, %v1016_v29  ;;  %v1020_v41 = vcvt.s32.f32 %v1013_v62  ;;  %v918_v31 = vmul.f32 %v917_v33, %v915_v45 }
 0x534   :  { %v1018_v2 = vand.u32 2147483647, %v1017_v35  ;;  %v919_v44 = vxor.u32 2147483648, %v918_v31 }
 0x536   :  { %v1021_v39 = vmul.f32 %v1020_v41, %v1018_v2  ;;  %v920_v49 = vsel %vm837_vm6, %v919_v44, %v918_v31  ;;  %vm927_vm6 = vweird.f32 %v2694_v4 }
 0x537   :  { %v923_v47 = vsel %vm836_vm8, %v2694_v4, %v920_v49 }
 0x538   :  { %v1022_v58 = vxor.u32 2147483648, %v1021_v39 }
 0x53a   :  { %v1023_v46 = vsel %vm940_vm5, %v1022_v58, %v1021_v39  ;;  %vm1030_vm5 = vweird.f32 %v2691_v0 }
 0x53b   :  { %v1026_v36 = vsel %vm939_vm7, %v2691_v0, %v1023_v46 }
 0x53c   :  { %2483 = vcosq.f32 %v1026_v36 }
 0x53d   :  { %2485 = vsinq.f32 %v1026_v36 }
 0x53e   :  { %2487 = vcosq.f32 %v923_v47 }
 0x53f   :  { %2489 = vsinq.f32 %v923_v47 }
 0x549   :  { %v2484_v5 = vpop.eup %2483 }
 0x54a   :  { %v2486_v3 = vpop.eup %2485  ;;  %v1037_v32 = vxor.u32 2147483648, %v2484_v5 }
 0x54b   :  { %v2488_v40 = vpop.eup %2487  ;;  %v1034_v12 = vxor.u32 2147483648, %v2486_v3 }
 0x54c   :  { %v2490_v42 = vpop.eup %2489  ;;  %v934_v25 = vxor.u32 2147483648, %v2488_v40  ;;  %v1038_v15 = vsel %vm1036_vm9, %v1037_v32, %v2486_v3  ;;  %v1660_v17 = vsel %vm1658_vm11, %v1037_v32, %v2486_v3 }
 0x54d   :  { %v931_v10 = vxor.u32 2147483648, %v2490_v42  ;;  %v1035_v57 = vsel %vm1033_vm1, %v2484_v5, %v1034_v12  ;;  %v1657_v51 = vsel %vm1655_vm10, %v2484_v5, %v1034_v12 }
 0x54e   :  { %v935_v20 = vsel %vm933_vm13, %v934_v25, %v2490_v42  ;;  %v1556_v21 = vsel %vm1554_vm15, %v934_v25, %v2490_v42  ;;  %v1039_v23 = vsel %vm1032_vm0, %v1035_v57, %v1038_v15  ;;  %v1661_v53 = vsel %vm1654_vm2, %v1657_v51, %v1660_v17 }
 0x54f   :  { %v932_v18 = vsel %vm930_vm12, %v2488_v40, %v931_v10  ;;  %v1553_v19 = vsel %vm1551_vm14, %v2488_v40, %v931_v10  ;;  %v1040_v54 = vsel %vm1030_vm5, nan, %v1039_v23  ;;  %v1662_v24 = vsel %vm1030_vm5, nan, %v1661_v53 }
 0x550   :  { %v936_v34 = vsel %vm929_vm3, %v932_v18, %v935_v20  ;;  %v1557_v22 = vsel %vm1550_vm4, %v1553_v19, %v1556_v21 }
 0x551   :  { %v937_v37 = vsel %vm927_vm6, nan, %v936_v34  ;;  %v1558_v1 = vsel %vm927_vm6, nan, %v1557_v22 }
 0x5cb   :  { %v2423_v63 = vpop.f32.mrf.mxu0  ;;  %v2430_v8 = vpop.f32.mrf.mxu1 }
 0x5cc   :  { %v2196_v13 = vmul.f32 %v2423_v63, %v1040_v54  ;;  %v2204_v26 = vmul.f32 %v2423_v63, %v1662_v24  ;;  %v2198_v27 = vmul.f32 %v2430_v8, %v1662_v24  ;;  %v2202_v28 = vmul.f32 %v2430_v8, %v1040_v54 }
 0x5cd   :  { %v2111_v29 = vpop.f32.mrf.mxu0  ;;  %v2186_v30 = vpop.f32.mrf.mxu1 }
 0x5ce   :  { %v2195_v59 = vmul.f32 %v2111_v29, %v937_v37  ;;  %v2203_v0 = vmul.f32 %v2111_v29, %v1558_v1  ;;  %v2197_v61 = vmul.f32 %v2186_v30, %v1558_v1  ;;  %v2201_v4 = vmul.f32 %v2186_v30, %v937_v37 }
 0x5cf   :  { %v2200_v62 = vadd.f32 %v2198_v27, %v2196_v13  ;;  %v2206_v35 = vsub.f32 %v2202_v28, %v2204_v26 }
 0x5d0   :  { %v2199_v56 = vadd.f32 %v2197_v61, %v2195_v59  ;;  %v2205_v11 = vsub.f32 %v2201_v4, %v2203_v0 }
 0x5d2   :  { %v2207_v2 = vadd.f32 %v2200_v62, %v2199_v56  ;;  %v2215_v41 = vadd.f32 %v2206_v35, %v2205_v11 }
 0x5d4   :  { %v2208_v45 = vrot.slane %v2207_v2, 4  ;;  %v2216_v33 = vrot.slane %v2215_v41, 4 }
 0x5d6   :  { %v2209_v39 = vadd.f32 %v2208_v45, %v2207_v2  ;;  %v2217_v31 = vadd.f32 %v2216_v33, %v2215_v41 }
 0x5d8   :  { %v2210_v58 = vrot.slane %v2209_v39, 2  ;;  %v2218_v44 = vrot.slane %v2217_v31, 2 }
 0x5da   :  { %v2211_v46 = vadd.f32 %v2210_v58, %v2209_v39  ;;  %v2219_v49 = vadd.f32 %v2218_v44, %v2217_v31 }
 0x5dc   :  { %v2212_v36 = vrot.slane %v2211_v46, 1  ;;  %v2220_v47 = vrot.slane %v2219_v49, 1 }
 0x5de   :  { %v2213_v48 = vadd.f32 %v2212_v36, %v2211_v46  ;;  %v2221_v50 = vadd.f32 %v2220_v47, %v2219_v49 }
 0x5e0   :  { %v2214_v16 = vmul.f32 0.25, %v2213_v48  ;;  %v2222_v38 = vmul.f32 0.25, %v2221_v50 }
 0x5e2   :  { %v2223_v55 = vmul.f32 %v2214_v16, %v2214_v16  ;;  %v2224_v43 = vmul.f32 %v2222_v38, %v2222_v38 }
 0x5e4   :  { %v2225_v60 = vadd.f32 %v2224_v43, %v2223_v55 }
 0x5e6   :  { %2226 = vst [vmem:[#allocation2] sm:$0x1] %v2225_v60 }
 0x5e7   :  { %2502 = shalt.err (!%p2499_p4)
}
 0x5e8   :  { %2236 = dma.vmem_to_hbm [thread:$0]  %s2234_s15, 16, %s3074_s11, [#allocation3]  }
 0x5e9   :  { %2511 = dma.done.wait [#allocation3], 16  }
 0x5ea   :  { %2512 = vsyncadd [#allocation3], 4294967280 }
 0x5eb   :  { %2240 = vsyncpa [#allocation3], 1 }

</bundles_post_ra>
